<compile_context>
chip_gen: v5e
topology: v5e:2x2
jax: 0.10.0
libtpu: 0.0.40
codegen_flags: <defaults>
</compile_context>

<pallas_src>
import functools
import math

import jax
import jax.numpy as jnp
from jax.experimental import pallas as pl
from jax.experimental.pallas import tpu as pltpu


# ----------------------------------------------------------------------------
# Fused kernel: conv3x3 -> ReLU -> conv3x3 for B images per grid step
# ----------------------------------------------------------------------------
def _gcnn_fused_kernel(x_ref, w1_ref, b1_ref, w2_ref, b2_ref, mask_ref, o_ref,
                       *, Wp, BL):
    # x_ref   : (1, Cin, BL)   zero-padded images, lane index = b*Hp*Wp + r*Wp + c
    # w1_ref  : (9, Ch, Cin)   tap-major (dy, dx) layer-1 weights
    # b1_ref  : (Ch, 1)
    # w2_ref  : (9, Cout, Ch)  tap-major layer-2 weights
    # b2_ref  : (Cout, 1)
    # mask_ref: (1, BL)        1.0 inside the true HxW image, 0.0 in halo / pad
    # o_ref   : (1, Cout, BL)  lane-dense output on the same padded grid
    x = x_ref[0]
    mask = mask_ref[...]

    def conv3x3(src, w_ref):
        n_out = w_ref.shape[1]
        acc = jnp.zeros((n_out, BL), jnp.float32)
        t = 0
        for dy in range(3):
            for dx in range(3):
                off = (dy - 1) * Wp + (dx - 1)       # static tap offset on the flat grid
                patch = src if off == 0 else pltpu.roll(src, shift=(-off) % BL, axis=1)
                acc = acc + jnp.dot(w_ref[t], patch,
                                    preferred_element_type=jnp.float32)
                t += 1
        return acc

    # Layer 1: conv + bias + ReLU; masking zeroes everything outside the true image,
    # which reproduces layer 2's zero padding with no scratch writes.
    h = jnp.maximum(conv3x3(x, w1_ref) + b1_ref[...], 0.0) * mask
    # Layer 2: conv + bias (only the true-image lanes are read back by the wrapper).
    o_ref[0] = (conv3x3(h, w2_ref) + b2_ref[...]).astype(o_ref.dtype)


# ----------------------------------------------------------------------------
# Wrapper: layout plumbing only at the module boundary
# ----------------------------------------------------------------------------
def gcnn_forward_pallas(x_nchw, w1, b1, w2, b2, images_per_step=None):
    # x_nchw: (N, Cin, H, W); weights in PyTorch convention (Cout, Cin, 3, 3).
    N, cin, H, W = x_nchw.shape
    ch = w1.shape[0]
    cout = w2.shape[0]

    # Padded per-image grid: halo of 2 rows/cols (1 for conv1's receptive field plus the
    # ring that becomes conv2's zero padding).  Width is padded so Hp*Wp is a multiple
    # of 128 -> every roll / store is lane-tile aligned.
    Hp = H + 4
    lane_step = 128 // math.gcd(Hp, 128)
    Wp = -(-(W + 4) // lane_step) * lane_step
    L = Hp * Wp

    if images_per_step is None:
        B = max(1, min(4, N // 2))      # amortize per-step overhead, keep >= 2 grid steps
    else:
        B = images_per_step
    G = -(-N // B)                      # grid length
    N_pad = G * B
    BL = B * L

    x = x_nchw.astype(jnp.float32)
    if N_pad != N:
        x = jnp.pad(x, ((0, N_pad - N), (0, 0), (0, 0), (0, 0)))
    x = jnp.pad(x, ((0, 0), (0, 0), (2, 2), (2, Wp - W - 2)))      # (N_pad, Cin, Hp, Wp)
    x = x.reshape(G, B, cin, Hp, Wp).transpose(0, 2, 1, 3, 4).reshape(G, cin, BL)

    # (Cout, Cin, 3, 3) -> (9, Cout, Cin), tap-major (dy, dx): w_mat[t] = w[:, :, dy, dx].
    w1_mat = jnp.transpose(w1, (2, 3, 0, 1)).reshape(9, ch, cin).astype(jnp.float32)
    w2_mat = jnp.transpose(w2, (2, 3, 0, 1)).reshape(9, cout, ch).astype(jnp.float32)
    b1_col = b1.reshape(ch, 1).astype(jnp.float32)
    b2_col = b2.reshape(cout, 1).astype(jnp.float32)

    # Grid-invariant validity mask (1 on the true HxW pixels of each padded plane).
    m = jnp.zeros((Hp, Wp), jnp.float32).at[2:H + 2, 2:W + 2].set(1.0)
    mask = jnp.tile(m.reshape(-1), B).reshape(1, BL)

    kernel = functools.partial(_gcnn_fused_kernel, Wp=Wp, BL=BL)
    out = pl.pallas_call(
        kernel,
        out_shape=jax.ShapeDtypeStruct((G, cout, BL), jnp.float32),
        grid=(G,),
        in_specs=[
            pl.BlockSpec((1, cin, BL), lambda n: (n, 0, 0)),
            pl.BlockSpec((9, ch, cin), lambda n: (0, 0, 0)),
            pl.BlockSpec((ch, 1), lambda n: (0, 0)),
            pl.BlockSpec((9, cout, ch), lambda n: (0, 0, 0)),
            pl.BlockSpec((cout, 1), lambda n: (0, 0)),
            pl.BlockSpec((1, BL), lambda n: (0, 0)),        # mask stays VMEM resident
        ],
        out_specs=pl.BlockSpec((1, cout, BL), lambda n: (n, 0, 0)),
        compiler_params=pltpu.CompilerParams(
            dimension_semantics=("parallel",),
            vmem_limit_bytes=32 * 1024 * 1024,
        ),
    )(x, w1_mat, b1_col, w2_mat, b2_col, mask)

    # Crop the true HxW region and restore NCHW (tiny XLA ops).
    out = out.reshape(G, cout, B, Hp, Wp).transpose(0, 2, 1, 3, 4)
    out = out.reshape(N_pad, cout, Hp, Wp)[:N, :, 2:H + 2, 2:W + 2]
    return out


# ----------------------------------------------------------------------------
# CNN forward (matches the PyTorch module) + params
# ----------------------------------------------------------------------------
def init_params(channel_num, key):
    k1, k2, k3, k4 = jax.random.split(key, 4)
    w1 = jax.random.normal(k1, (channel_num, 3, 3, 3), jnp.float32) * 0.1
    b1 = jax.random.normal(k2, (channel_num,), jnp.float32) * 0.01
    w2 = jax.random.normal(k3, (3, channel_num, 3, 3), jnp.float32) * 0.1
    b2 = jax.random.normal(k4, (3,), jnp.float32) * 0.01
    return {"w1": w1, "b1": b1, "w2": w2, "b2": b2}


def cnn_forward(params, x0):
    # CNN.forward: xout = self.normal_net(x0[:, :3, :, :])
    x = x0[:, :3, :, :]
    return gcnn_forward_pallas(x, params["w1"], params["b1"],
                               params["w2"], params["b2"])


def _reference_forward(params, x0):
    x = x0[:, :3, :, :]
    dn = ("NCHW", "OIHW", "NCHW")
    y = jax.lax.conv_general_dilated(x, params["w1"], (1, 1), ((1, 1), (1, 1)),
                                     dimension_numbers=dn)
    y = jnp.maximum(y + params["b1"][None, :, None, None], 0.0)
    y = jax.lax.conv_general_dilated(y, params["w2"], (1, 1), ((1, 1), (1, 1)),
                                     dimension_numbers=dn)
    return y + params["b2"][None, :, None, None]


if __name__ == "__main__":
    key = jax.random.PRNGKey(0)
    kx, kp = jax.random.split(key)

    N, C, H, W = 2, 4, 16, 16        # input has 4 channels; forward slices to :3
    channel_num = 8

    x0 = jax.random.normal(kx, (N, C, H, W), jnp.float32)
    params = init_params(channel_num, kp)

    out = jax.jit(cnn_forward)(params, x0)
    out = jax.block_until_ready(out)

    assert out.shape == (N, 3, H, W), out.shape
    assert out.dtype == jnp.float32

    ref = _reference_forward(params, x0)
    err = float(jnp.max(jnp.abs(out - ref)))
    assert err < 1e-2, f"max abs error vs reference: {err}"
    print("KERNEL_OK")
</pallas_src>

<mosaic_0001>
module attributes {stable_mosaic.version = 11 : i64} {
  func.func @_gcnn_fused_kernel(%arg0: i32, %arg1: memref<1x3x640xf32, #tpu.memory_space<vmem>>, %arg2: memref<9x8x3xf32, #tpu.memory_space<vmem>>, %arg3: memref<8x1xf32, #tpu.memory_space<vmem>>, %arg4: memref<9x3x8xf32, #tpu.memory_space<vmem>>, %arg5: memref<3x1xf32, #tpu.memory_space<vmem>>, %arg6: memref<1x640xf32, #tpu.memory_space<vmem>>, %arg7: memref<1x3x640xf32, #tpu.memory_space<vmem>>) attributes {dimension_semantics = [#tpu.dimension_semantics<parallel>], iteration_bounds = array<i64: 2>, scalar_prefetch = 0 : i64, scratch_operands = 0 : i64, tpu.core_type = #tpu.core_type<tc>, window_params = [{transform_indices = @transform_0, window_bounds = array<i64: 1, 3, 640>}, {pipeline_mode = #tpu.pipeline_mode<synchronous>, transform_indices = @transform_1, window_bounds = array<i64: 9, 8, 3>}, {pipeline_mode = #tpu.pipeline_mode<synchronous>, transform_indices = @transform_2, window_bounds = array<i64: 8, 1>}, {pipeline_mode = #tpu.pipeline_mode<synchronous>, transform_indices = @transform_3, window_bounds = array<i64: 9, 3, 8>}, {pipeline_mode = #tpu.pipeline_mode<synchronous>, transform_indices = @transform_4, window_bounds = array<i64: 3, 1>}, {pipeline_mode = #tpu.pipeline_mode<synchronous>, transform_indices = @transform_5, window_bounds = array<i64: 1, 640>}, {transform_indices = @transform_6, window_bounds = array<i64: 1, 3, 640>}]} {
    %c0 = arith.constant 0 : index
    %c0_0 = arith.constant 0 : index
    %c0_1 = arith.constant 0 : index
    %0 = vector.load %arg1[%c0, %c0_0, %c0_1] : memref<1x3x640xf32, #tpu.memory_space<vmem>>, vector<1x3x640xf32>
    %1 = vector.shape_cast %0 : vector<1x3x640xf32> to vector<3x640xf32>
    %c0_2 = arith.constant 0 : index
    %c0_3 = arith.constant 0 : index
    %2 = vector.load %arg6[%c0_2, %c0_3] : memref<1x640xf32, #tpu.memory_space<vmem>>, vector<1x640xf32>
    %cst = arith.constant 0.000000e+00 : f32
    %3 = vector.broadcast %cst : f32 to vector<8x640xf32>
    %c33_i32 = arith.constant 33 : i32
    %4 = tpu.dynamic_rotate %1 by %c33_i32 dim 1 : vector<3x640xf32>, i32 -> vector<3x640xf32>
    %c0_4 = arith.constant 0 : index
    %c0_5 = arith.constant 0 : index
    %c0_6 = arith.constant 0 : index
    %5 = vector.load %arg2[%c0_4, %c0_5, %c0_6] : memref<9x8x3xf32, #tpu.memory_space<vmem>>, vector<1x8x3xf32>
    %6 = vector.shape_cast %5 : vector<1x8x3xf32> to vector<8x3xf32>
    %cst_7 = arith.constant dense<0.000000e+00> : vector<8x640xf32>
    %7 = tpu.matmul %6, %4, %cst_7 {dimension_numbers = #tpu.dot_dimension_numbers<[1], [0], [0], [1], [0, 0, 1, 1], [], []>} : vector<8x3xf32>, vector<3x640xf32>, vector<8x640xf32> -> vector<8x640xf32>
    %8 = arith.addf %3, %7 : vector<8x640xf32>
    %c32_i32 = arith.constant 32 : i32
    %9 = tpu.dynamic_rotate %1 by %c32_i32 dim 1 : vector<3x640xf32>, i32 -> vector<3x640xf32>
    %c1 = arith.constant 1 : index
    %c0_8 = arith.constant 0 : index
    %c0_9 = arith.constant 0 : index
    %10 = vector.load %arg2[%c1, %c0_8, %c0_9] : memref<9x8x3xf32, #tpu.memory_space<vmem>>, vector<1x8x3xf32>
    %11 = vector.shape_cast %10 : vector<1x8x3xf32> to vector<8x3xf32>
    %cst_10 = arith.constant dense<0.000000e+00> : vector<8x640xf32>
    %12 = tpu.matmul %11, %9, %cst_10 {dimension_numbers = #tpu.dot_dimension_numbers<[1], [0], [0], [1], [0, 0, 1, 1], [], []>} : vector<8x3xf32>, vector<3x640xf32>, vector<8x640xf32> -> vector<8x640xf32>
    %13 = arith.addf %8, %12 : vector<8x640xf32>
    %c31_i32 = arith.constant 31 : i32
    %14 = tpu.dynamic_rotate %1 by %c31_i32 dim 1 : vector<3x640xf32>, i32 -> vector<3x640xf32>
    %c2 = arith.constant 2 : index
    %c0_11 = arith.constant 0 : index
    %c0_12 = arith.constant 0 : index
    %15 = vector.load %arg2[%c2, %c0_11, %c0_12] : memref<9x8x3xf32, #tpu.memory_space<vmem>>, vector<1x8x3xf32>
    %16 = vector.shape_cast %15 : vector<1x8x3xf32> to vector<8x3xf32>
    %cst_13 = arith.constant dense<0.000000e+00> : vector<8x640xf32>
    %17 = tpu.matmul %16, %14, %cst_13 {dimension_numbers = #tpu.dot_dimension_numbers<[1], [0], [0], [1], [0, 0, 1, 1], [], []>} : vector<8x3xf32>, vector<3x640xf32>, vector<8x640xf32> -> vector<8x640xf32>
    %18 = arith.addf %13, %17 : vector<8x640xf32>
    %c1_i32 = arith.constant 1 : i32
    %19 = tpu.dynamic_rotate %1 by %c1_i32 dim 1 : vector<3x640xf32>, i32 -> vector<3x640xf32>
    %c3 = arith.constant 3 : index
    %c0_14 = arith.constant 0 : index
    %c0_15 = arith.constant 0 : index
    %20 = vector.load %arg2[%c3, %c0_14, %c0_15] : memref<9x8x3xf32, #tpu.memory_space<vmem>>, vector<1x8x3xf32>
    %21 = vector.shape_cast %20 : vector<1x8x3xf32> to vector<8x3xf32>
    %cst_16 = arith.constant dense<0.000000e+00> : vector<8x640xf32>
    %22 = tpu.matmul %21, %19, %cst_16 {dimension_numbers = #tpu.dot_dimension_numbers<[1], [0], [0], [1], [0, 0, 1, 1], [], []>} : vector<8x3xf32>, vector<3x640xf32>, vector<8x640xf32> -> vector<8x640xf32>
    %23 = arith.addf %18, %22 : vector<8x640xf32>
    %c4 = arith.constant 4 : index
    %c0_17 = arith.constant 0 : index
    %c0_18 = arith.constant 0 : index
    %24 = vector.load %arg2[%c4, %c0_17, %c0_18] : memref<9x8x3xf32, #tpu.memory_space<vmem>>, vector<1x8x3xf32>
    %25 = vector.shape_cast %24 : vector<1x8x3xf32> to vector<8x3xf32>
    %cst_19 = arith.constant dense<0.000000e+00> : vector<8x640xf32>
    %26 = tpu.matmul %25, %1, %cst_19 {dimension_numbers = #tpu.dot_dimension_numbers<[1], [0], [0], [1], [0, 0, 1, 1], [], []>} : vector<8x3xf32>, vector<3x640xf32>, vector<8x640xf32> -> vector<8x640xf32>
    %27 = arith.addf %23, %26 : vector<8x640xf32>
    %c639_i32 = arith.constant 639 : i32
    %28 = tpu.dynamic_rotate %1 by %c639_i32 dim 1 : vector<3x640xf32>, i32 -> vector<3x640xf32>
    %c5 = arith.constant 5 : index
    %c0_20 = arith.constant 0 : index
    %c0_21 = arith.constant 0 : index
    %29 = vector.load %arg2[%c5, %c0_20, %c0_21] : memref<9x8x3xf32, #tpu.memory_space<vmem>>, vector<1x8x3xf32>
    %30 = vector.shape_cast %29 : vector<1x8x3xf32> to vector<8x3xf32>
    %cst_22 = arith.constant dense<0.000000e+00> : vector<8x640xf32>
    %31 = tpu.matmul %30, %28, %cst_22 {dimension_numbers = #tpu.dot_dimension_numbers<[1], [0], [0], [1], [0, 0, 1, 1], [], []>} : vector<8x3xf32>, vector<3x640xf32>, vector<8x640xf32> -> vector<8x640xf32>
    %32 = arith.addf %27, %31 : vector<8x640xf32>
    %c609_i32 = arith.constant 609 : i32
    %33 = tpu.dynamic_rotate %1 by %c609_i32 dim 1 : vector<3x640xf32>, i32 -> vector<3x640xf32>
    %c6 = arith.constant 6 : index
    %c0_23 = arith.constant 0 : index
    %c0_24 = arith.constant 0 : index
    %34 = vector.load %arg2[%c6, %c0_23, %c0_24] : memref<9x8x3xf32, #tpu.memory_space<vmem>>, vector<1x8x3xf32>
    %35 = vector.shape_cast %34 : vector<1x8x3xf32> to vector<8x3xf32>
    %cst_25 = arith.constant dense<0.000000e+00> : vector<8x640xf32>
    %36 = tpu.matmul %35, %33, %cst_25 {dimension_numbers = #tpu.dot_dimension_numbers<[1], [0], [0], [1], [0, 0, 1, 1], [], []>} : vector<8x3xf32>, vector<3x640xf32>, vector<8x640xf32> -> vector<8x640xf32>
    %37 = arith.addf %32, %36 : vector<8x640xf32>
    %c608_i32 = arith.constant 608 : i32
    %38 = tpu.dynamic_rotate %1 by %c608_i32 dim 1 : vector<3x640xf32>, i32 -> vector<3x640xf32>
    %c7 = arith.constant 7 : index
    %c0_26 = arith.constant 0 : index
    %c0_27 = arith.constant 0 : index
    %39 = vector.load %arg2[%c7, %c0_26, %c0_27] : memref<9x8x3xf32, #tpu.memory_space<vmem>>, vector<1x8x3xf32>
    %40 = vector.shape_cast %39 : vector<1x8x3xf32> to vector<8x3xf32>
    %cst_28 = arith.constant dense<0.000000e+00> : vector<8x640xf32>
    %41 = tpu.matmul %40, %38, %cst_28 {dimension_numbers = #tpu.dot_dimension_numbers<[1], [0], [0], [1], [0, 0, 1, 1], [], []>} : vector<8x3xf32>, vector<3x640xf32>, vector<8x640xf32> -> vector<8x640xf32>
    %42 = arith.addf %37, %41 : vector<8x640xf32>
    %c607_i32 = arith.constant 607 : i32
    %43 = tpu.dynamic_rotate %1 by %c607_i32 dim 1 : vector<3x640xf32>, i32 -> vector<3x640xf32>
    %c8 = arith.constant 8 : index
    %c0_29 = arith.constant 0 : index
    %c0_30 = arith.constant 0 : index
    %44 = vector.load %arg2[%c8, %c0_29, %c0_30] : memref<9x8x3xf32, #tpu.memory_space<vmem>>, vector<1x8x3xf32>
    %45 = vector.shape_cast %44 : vector<1x8x3xf32> to vector<8x3xf32>
    %cst_31 = arith.constant dense<0.000000e+00> : vector<8x640xf32>
    %46 = tpu.matmul %45, %43, %cst_31 {dimension_numbers = #tpu.dot_dimension_numbers<[1], [0], [0], [1], [0, 0, 1, 1], [], []>} : vector<8x3xf32>, vector<3x640xf32>, vector<8x640xf32> -> vector<8x640xf32>
    %47 = arith.addf %42, %46 : vector<8x640xf32>
    %c0_32 = arith.constant 0 : index
    %c0_33 = arith.constant 0 : index
    %48 = vector.load %arg3[%c0_32, %c0_33] : memref<8x1xf32, #tpu.memory_space<vmem>>, vector<8x1xf32>
    %49 = vector.broadcast %48 : vector<8x1xf32> to vector<8x640xf32>
    %50 = arith.addf %47, %49 : vector<8x640xf32>
    %cst_34 = arith.constant 0.000000e+00 : f32
    %51 = vector.broadcast %cst_34 : f32 to vector<8x640xf32>
    %52 = arith.maximumf %50, %51 : vector<8x640xf32>
    %53 = vector.broadcast %2 : vector<1x640xf32> to vector<8x640xf32>
    %54 = arith.mulf %52, %53 : vector<8x640xf32>
    %cst_35 = arith.constant 0.000000e+00 : f32
    %55 = vector.broadcast %cst_35 : f32 to vector<3x640xf32>
    %c33_i32_36 = arith.constant 33 : i32
    %56 = tpu.dynamic_rotate %54 by %c33_i32_36 dim 1 : vector<8x640xf32>, i32 -> vector<8x640xf32>
    %c0_37 = arith.constant 0 : index
    %c0_38 = arith.constant 0 : index
    %c0_39 = arith.constant 0 : index
    %57 = vector.load %arg4[%c0_37, %c0_38, %c0_39] : memref<9x3x8xf32, #tpu.memory_space<vmem>>, vector<1x3x8xf32>
    %58 = vector.shape_cast %57 : vector<1x3x8xf32> to vector<3x8xf32>
    %cst_40 = arith.constant dense<0.000000e+00> : vector<3x640xf32>
    %59 = tpu.matmul %58, %56, %cst_40 {dimension_numbers = #tpu.dot_dimension_numbers<[1], [0], [0], [1], [0, 0, 1, 1], [], []>} : vector<3x8xf32>, vector<8x640xf32>, vector<3x640xf32> -> vector<3x640xf32>
    %60 = arith.addf %55, %59 : vector<3x640xf32>
    %c32_i32_41 = arith.constant 32 : i32
    %61 = tpu.dynamic_rotate %54 by %c32_i32_41 dim 1 : vector<8x640xf32>, i32 -> vector<8x640xf32>
    %c1_42 = arith.constant 1 : index
    %c0_43 = arith.constant 0 : index
    %c0_44 = arith.constant 0 : index
    %62 = vector.load %arg4[%c1_42, %c0_43, %c0_44] : memref<9x3x8xf32, #tpu.memory_space<vmem>>, vector<1x3x8xf32>
    %63 = vector.shape_cast %62 : vector<1x3x8xf32> to vector<3x8xf32>
    %cst_45 = arith.constant dense<0.000000e+00> : vector<3x640xf32>
    %64 = tpu.matmul %63, %61, %cst_45 {dimension_numbers = #tpu.dot_dimension_numbers<[1], [0], [0], [1], [0, 0, 1, 1], [], []>} : vector<3x8xf32>, vector<8x640xf32>, vector<3x640xf32> -> vector<3x640xf32>
    %65 = arith.addf %60, %64 : vector<3x640xf32>
    %c31_i32_46 = arith.constant 31 : i32
    %66 = tpu.dynamic_rotate %54 by %c31_i32_46 dim 1 : vector<8x640xf32>, i32 -> vector<8x640xf32>
    %c2_47 = arith.constant 2 : index
    %c0_48 = arith.constant 0 : index
    %c0_49 = arith.constant 0 : index
    %67 = vector.load %arg4[%c2_47, %c0_48, %c0_49] : memref<9x3x8xf32, #tpu.memory_space<vmem>>, vector<1x3x8xf32>
    %68 = vector.shape_cast %67 : vector<1x3x8xf32> to vector<3x8xf32>
    %cst_50 = arith.constant dense<0.000000e+00> : vector<3x640xf32>
    %69 = tpu.matmul %68, %66, %cst_50 {dimension_numbers = #tpu.dot_dimension_numbers<[1], [0], [0], [1], [0, 0, 1, 1], [], []>} : vector<3x8xf32>, vector<8x640xf32>, vector<3x640xf32> -> vector<3x640xf32>
    %70 = arith.addf %65, %69 : vector<3x640xf32>
    %c1_i32_51 = arith.constant 1 : i32
    %71 = tpu.dynamic_rotate %54 by %c1_i32_51 dim 1 : vector<8x640xf32>, i32 -> vector<8x640xf32>
    %c3_52 = arith.constant 3 : index
    %c0_53 = arith.constant 0 : index
    %c0_54 = arith.constant 0 : index
    %72 = vector.load %arg4[%c3_52, %c0_53, %c0_54] : memref<9x3x8xf32, #tpu.memory_space<vmem>>, vector<1x3x8xf32>
    %73 = vector.shape_cast %72 : vector<1x3x8xf32> to vector<3x8xf32>
    %cst_55 = arith.constant dense<0.000000e+00> : vector<3x640xf32>
    %74 = tpu.matmul %73, %71, %cst_55 {dimension_numbers = #tpu.dot_dimension_numbers<[1], [0], [0], [1], [0, 0, 1, 1], [], []>} : vector<3x8xf32>, vector<8x640xf32>, vector<3x640xf32> -> vector<3x640xf32>
    %75 = arith.addf %70, %74 : vector<3x640xf32>
    %c4_56 = arith.constant 4 : index
    %c0_57 = arith.constant 0 : index
    %c0_58 = arith.constant 0 : index
    %76 = vector.load %arg4[%c4_56, %c0_57, %c0_58] : memref<9x3x8xf32, #tpu.memory_space<vmem>>, vector<1x3x8xf32>
    %77 = vector.shape_cast %76 : vector<1x3x8xf32> to vector<3x8xf32>
    %cst_59 = arith.constant dense<0.000000e+00> : vector<3x640xf32>
    %78 = tpu.matmul %77, %54, %cst_59 {dimension_numbers = #tpu.dot_dimension_numbers<[1], [0], [0], [1], [0, 0, 1, 1], [], []>} : vector<3x8xf32>, vector<8x640xf32>, vector<3x640xf32> -> vector<3x640xf32>
    %79 = arith.addf %75, %78 : vector<3x640xf32>
    %c639_i32_60 = arith.constant 639 : i32
    %80 = tpu.dynamic_rotate %54 by %c639_i32_60 dim 1 : vector<8x640xf32>, i32 -> vector<8x640xf32>
    %c5_61 = arith.constant 5 : index
    %c0_62 = arith.constant 0 : index
    %c0_63 = arith.constant 0 : index
    %81 = vector.load %arg4[%c5_61, %c0_62, %c0_63] : memref<9x3x8xf32, #tpu.memory_space<vmem>>, vector<1x3x8xf32>
    %82 = vector.shape_cast %81 : vector<1x3x8xf32> to vector<3x8xf32>
    %cst_64 = arith.constant dense<0.000000e+00> : vector<3x640xf32>
    %83 = tpu.matmul %82, %80, %cst_64 {dimension_numbers = #tpu.dot_dimension_numbers<[1], [0], [0], [1], [0, 0, 1, 1], [], []>} : vector<3x8xf32>, vector<8x640xf32>, vector<3x640xf32> -> vector<3x640xf32>
    %84 = arith.addf %79, %83 : vector<3x640xf32>
    %c609_i32_65 = arith.constant 609 : i32
    %85 = tpu.dynamic_rotate %54 by %c609_i32_65 dim 1 : vector<8x640xf32>, i32 -> vector<8x640xf32>
    %c6_66 = arith.constant 6 : index
    %c0_67 = arith.constant 0 : index
    %c0_68 = arith.constant 0 : index
    %86 = vector.load %arg4[%c6_66, %c0_67, %c0_68] : memref<9x3x8xf32, #tpu.memory_space<vmem>>, vector<1x3x8xf32>
    %87 = vector.shape_cast %86 : vector<1x3x8xf32> to vector<3x8xf32>
    %cst_69 = arith.constant dense<0.000000e+00> : vector<3x640xf32>
    %88 = tpu.matmul %87, %85, %cst_69 {dimension_numbers = #tpu.dot_dimension_numbers<[1], [0], [0], [1], [0, 0, 1, 1], [], []>} : vector<3x8xf32>, vector<8x640xf32>, vector<3x640xf32> -> vector<3x640xf32>
    %89 = arith.addf %84, %88 : vector<3x640xf32>
    %c608_i32_70 = arith.constant 608 : i32
    %90 = tpu.dynamic_rotate %54 by %c608_i32_70 dim 1 : vector<8x640xf32>, i32 -> vector<8x640xf32>
    %c7_71 = arith.constant 7 : index
    %c0_72 = arith.constant 0 : index
    %c0_73 = arith.constant 0 : index
    %91 = vector.load %arg4[%c7_71, %c0_72, %c0_73] : memref<9x3x8xf32, #tpu.memory_space<vmem>>, vector<1x3x8xf32>
    %92 = vector.shape_cast %91 : vector<1x3x8xf32> to vector<3x8xf32>
    %cst_74 = arith.constant dense<0.000000e+00> : vector<3x640xf32>
    %93 = tpu.matmul %92, %90, %cst_74 {dimension_numbers = #tpu.dot_dimension_numbers<[1], [0], [0], [1], [0, 0, 1, 1], [], []>} : vector<3x8xf32>, vector<8x640xf32>, vector<3x640xf32> -> vector<3x640xf32>
    %94 = arith.addf %89, %93 : vector<3x640xf32>
    %c607_i32_75 = arith.constant 607 : i32
    %95 = tpu.dynamic_rotate %54 by %c607_i32_75 dim 1 : vector<8x640xf32>, i32 -> vector<8x640xf32>
    %c8_76 = arith.constant 8 : index
    %c0_77 = arith.constant 0 : index
    %c0_78 = arith.constant 0 : index
    %96 = vector.load %arg4[%c8_76, %c0_77, %c0_78] : memref<9x3x8xf32, #tpu.memory_space<vmem>>, vector<1x3x8xf32>
    %97 = vector.shape_cast %96 : vector<1x3x8xf32> to vector<3x8xf32>
    %cst_79 = arith.constant dense<0.000000e+00> : vector<3x640xf32>
    %98 = tpu.matmul %97, %95, %cst_79 {dimension_numbers = #tpu.dot_dimension_numbers<[1], [0], [0], [1], [0, 0, 1, 1], [], []>} : vector<3x8xf32>, vector<8x640xf32>, vector<3x640xf32> -> vector<3x640xf32>
    %99 = arith.addf %94, %98 : vector<3x640xf32>
    %c0_80 = arith.constant 0 : index
    %c0_81 = arith.constant 0 : index
    %100 = vector.load %arg5[%c0_80, %c0_81] : memref<3x1xf32, #tpu.memory_space<vmem>>, vector<3x1xf32>
    %101 = vector.broadcast %100 : vector<3x1xf32> to vector<3x640xf32>
    %102 = arith.addf %99, %101 : vector<3x640xf32>
    %c0_82 = arith.constant 0 : index
    %c0_83 = arith.constant 0 : index
    %c0_84 = arith.constant 0 : index
    %103 = vector.load %arg7[%c0_82, %c0_83, %c0_84] : memref<1x3x640xf32, #tpu.memory_space<vmem>>, vector<1x3x640xf32>
    %104 = vector.shape_cast %103 : vector<1x3x640xf32> to vector<3x640xf32>
    %105 = vector.shape_cast %102 : vector<3x640xf32> to vector<1x3x640xf32>
    tpu.vector_store %arg7[%c0_82, %c0_83, %c0_84], %105 {strides = array<i32>} : memref<1x3x640xf32, #tpu.memory_space<vmem>>, vector<1x3x640xf32>,
    return
  }
  func.func @transform_0(%arg0: i32) -> (i32, i32, i32) {
    %c0_i32 = arith.constant 0 : i32
    %c0_i32_0 = arith.constant 0 : i32
    %c0_i32_1 = arith.constant 0 : i32
    return %arg0, %c0_i32, %c0_i32_0 : i32, i32, i32
  }
  func.func @transform_1(%arg0: i32) -> (i32, i32, i32) {
    %c0_i32 = arith.constant 0 : i32
    %c0_i32_0 = arith.constant 0 : i32
    %c0_i32_1 = arith.constant 0 : i32
    %c0_i32_2 = arith.constant 0 : i32
    return %c0_i32, %c0_i32_0, %c0_i32_1 : i32, i32, i32
  }
  func.func @transform_2(%arg0: i32) -> (i32, i32) {
    %c0_i32 = arith.constant 0 : i32
    %c0_i32_0 = arith.constant 0 : i32
    %c0_i32_1 = arith.constant 0 : i32
    return %c0_i32, %c0_i32_0 : i32, i32
  }
  func.func @transform_3(%arg0: i32) -> (i32, i32, i32) {
    %c0_i32 = arith.constant 0 : i32
    %c0_i32_0 = arith.constant 0 : i32
    %c0_i32_1 = arith.constant 0 : i32
    %c0_i32_2 = arith.constant 0 : i32
    return %c0_i32, %c0_i32_0, %c0_i32_1 : i32, i32, i32
  }
  func.func @transform_4(%arg0: i32) -> (i32, i32) {
    %c0_i32 = arith.constant 0 : i32
    %c0_i32_0 = arith.constant 0 : i32
    %c0_i32_1 = arith.constant 0 : i32
    return %c0_i32, %c0_i32_0 : i32, i32
  }
  func.func @transform_5(%arg0: i32) -> (i32, i32) {
    %c0_i32 = arith.constant 0 : i32
    %c0_i32_0 = arith.constant 0 : i32
    %c0_i32_1 = arith.constant 0 : i32
    return %c0_i32, %c0_i32_0 : i32, i32
  }
  func.func @transform_6(%arg0: i32) -> (i32, i32, i32) {
    %c0_i32 = arith.constant 0 : i32
    %c0_i32_0 = arith.constant 0 : i32
    %c0_i32_1 = arith.constant 0 : i32
    return %arg0, %c0_i32, %c0_i32_0 : i32, i32, i32
  }
}

</mosaic_0001>

<bundles_post_ra>
// kernel: cnn_forward.1
= control target key start
LH: loop header
LB: loop body
LE: loop exit
PB: predicated region body
PF: predicated region fallthrough
CT: control target
= control target key end

     0   :  { %s3155_s21 = smov 0   ;;  %s3694_s0 = inlined_call_operand.vmem [shape: f32[2,3,640], index: 0, kind: input, shape index: {}]   ;;  %s3695_s1 = inlined_call_operand.vmem [shape: f32[9,8,3], index: 1, kind: input, shape index: {}]   ;;  %s3696_s2 = inlined_call_operand.vmem [shape: f32[8,1], index: 2, kind: input, shape index: {}]   ;;  %s3697_s3 = inlined_call_operand.vmem [shape: f32[9,3,8], index: 3, kind: input, shape index: {}]   ;;  %s3698_s4 = inlined_call_operand.vmem [shape: f32[3,1], index: 4, kind: input, shape index: {}]   ;;  %s3699_s5 = inlined_call_operand.vmem [shape: f32[1,640], index: 5, kind: input, shape index: {}]   ;;  %s3700_s6 = inlined_call_operand.vmem [shape: f32[2,3,640], index: 6, kind: output, shape index: {}]  }
   0x1 LB: > { %s2842_s22 = sadd.s32 4294967295, %s3109_s21   ;;  %p2846_p0 = scmp.ge.s32.totalorder %s3109_s21, 1  ;;  %s3109_s21 = sphi %s3155_s21, %s16_s21  }
   0x2   : > { %p212_p1 = scmp.lt.s32.totalorder %s3109_s21, 3 }
   0x4   : > { %p213_p2 = pnand %p2846_p0, %p212_p1 }
   0x5   : > { %p242_p3 = scmp.lt.s32.totalorder (!%p213_p2), %s2842_s22, 1  ;;  %s3111_s27 = smov (!%p213_p2), 33  }
   0x6   : > { %216 = sbr.rel (%p213_p2) target bundleno = 721 (0x2d1), region = 44  ;;  %s3112_s28 = smov (!%p213_p2), 32  }
   0x7   : > { %s3113_s29 = smov (!%p213_p2), 31   ;;  %s3114_s30 = smov (!%p213_p2), 1  }
   0x8   : > { %s3115_s7 = smov (!%p213_p2), 127   ;;  %s3116_s8 = smov (!%p213_p2), 97  }
   0x9   : > { %s3117_s9 = smov (!%p213_p2), 96   ;;  %s3118_s10 = smov (!%p213_p2), 95  }
   0xb   : > { %s3702_s22 = smov (!%p242_p3, %s2842_s22), 1  ;;  %v284_v53 = vlaneseq  ;;  %vm330_vm1 = vcmask 1042432   ;;  %v2849_v58 = vld [vmem:[%s3695_s1 + $0x8] sm:$0xff]  ;;  %vm326_vm2 = vcmask 23552   ;;  %vm1695_vm10 = vcmask 64512  }
   0xc   : > { %s3002_s23 = smul.u32 20, %s3702_s22  ;;  %vm2779_vm11 = vcmask 1043456  }
   0xd   : > { %v3254_v55 = vand.u32 127, %v284_v53 }
   0xe   : > { %s246_s26 = scalar_lea.vmem %s3694_s0, %s3002_s23 }
   0xf   : > { %v3171_v0 = vld [vmem:[%s246_s26 + $0x8] sm:$0x77]  ;;  %v3173_v1 = vld [vmem:[%s246_s26] sm:$0x77]  ;;  %v3175_v2 = vld [vmem:[%s246_s26 + $0x10] sm:$0x7] }
  0x10   : > { %261 = vst [vmem:[#allocation1 + $0x10] ss:$2 sm:$0xff] %v3171_v0  ;;  %vm318_vm0 = vcmp.lt.s32.totalorder %v3254_v55, 32  ;;  %vm286_vm3 = vcmp.lt.s32.totalorder %v3254_v55, 33  ;;  %vm589_vm4 = vcmp.lt.s32.totalorder %v3254_v55, 31  ;;  %vm745_vm5 = vcmp.lt.s32.totalorder %v3254_v55, 1 }
  0x11   : > { %259 = vst [vmem:[#allocation1] ss:$2 sm:$0xff] %v3173_v1  ;;  %vm1031_vm6 = vcmp.lt.s32.totalorder %v3254_v55, 127  ;;  %vm1187_vm7 = vcmp.lt.s32.totalorder %v3254_v55, 97  ;;  %vm1343_vm8 = vcmp.lt.s32.totalorder %v3254_v55, 96  ;;  %vm1499_vm9 = vcmp.lt.s32.totalorder %v3254_v55, 95 }
  0x12   : > { %263 = vst [vmem:[#allocation1 + $0x20] ss:$2 sm:$0xff] %v3175_v2 }
  0x17   : > { %v266_v3 = vld.sshfl [vmem:[#allocation1 + $0x10] sm:$0xff pattern:$0x75316420]  ;;  %v267_v4 = vld.sshfl [vmem:[#allocation1 + $0x18] sm:$0xff pattern:$0x75316420] }
  0x18   : > { %278 = vrot.lane.b32.xlu1 %v266_v3, %s3111_s27  ;;  %295 = vst [vmem:[#allocation1 + $0x10] ss:$2 sm:$0xff] %v3171_v0  ;;  %v265_v5 = vld.sshfl [vmem:[#allocation1 + $0x8] sm:$0xff pattern:$0x75316420] }
  0x19   : > { %276 = vrot.lane.b32.xlu0 %v265_v5, %s3111_s27  ;;  %v264_v6 = vld.sshfl [vmem:[#allocation1] sm:$0xff pattern:$0x75316420] }
  0x1a   : > { %v268_v7 = vld.sshfl [vmem:[#allocation1 + $0x20] sm:$0xff pattern:$0x75316420]  ;;  %293 = vst [vmem:[#allocation1] ss:$2 sm:$0xff] %v3173_v1  ;;  %274 = vrot.lane.b32.xlu2 %v264_v6, %s3111_s27 }
  0x1b   : > { %297 = vst [vmem:[#allocation1 + $0x20] ss:$2 sm:$0xff] %v3175_v2 }
  0x1f   : > { %v300_v8 = vld.sshfl [vmem:[#allocation1 + $0x10] sm:$0xff pattern:$0x75316420]  ;;  %v301_v9 = vld.sshfl [vmem:[#allocation1 + $0x18] sm:$0xff pattern:$0x75316420] }
  0x20   : > { %566 = vst [vmem:[#allocation1 + $0x10] ss:$2 sm:$0xff] %v3171_v0 }
  0x21   : > { %v299_v10 = vld.sshfl [vmem:[#allocation1 + $0x8] sm:$0xff pattern:$0x75316420]  ;;  %v298_v11 = vld.sshfl [vmem:[#allocation1] sm:$0xff pattern:$0x75316420] }
  0x22   : > { %310 = vrot.lane.b32.xlu1 %v299_v10, %s3112_s28  ;;  %308 = vrot.lane.b32.xlu0 %v298_v11, %s3112_s28  ;;  %564 = vst [vmem:[#allocation1] ss:$2 sm:$0xff] %v3173_v1  ;;  %v302_v12 = vld.sshfl [vmem:[#allocation1 + $0x20] sm:$0xff pattern:$0x75316420] }
  0x23   : > { %568 = vst [vmem:[#allocation1 + $0x20] ss:$2 sm:$0xff] %v3175_v2  ;;  %282 = vrot.lane.b32.xlu2 %v268_v7, %s3111_s27 }
  0x27   : > { %v571_v13 = vld.sshfl [vmem:[#allocation1 + $0x10] sm:$0xff pattern:$0x75316420]  ;;  %v572_v14 = vld.sshfl [vmem:[#allocation1 + $0x18] sm:$0xff pattern:$0x75316420] }
  0x28   : > { %722 = vst [vmem:[#allocation1 + $0x10] ss:$2 sm:$0xff] %v3171_v0 }
  0x29   : > { %v569_v15 = vld.sshfl [vmem:[#allocation1] sm:$0xff pattern:$0x75316420]  ;;  %v570_v16 = vld.sshfl [vmem:[#allocation1 + $0x8] sm:$0xff pattern:$0x75316420] }
  0x2a   : > { %312 = vrot.lane.b32.xlu1 %v300_v8, %s3112_s28  ;;  %316 = vrot.lane.b32.xlu0 %v302_v12, %s3112_s28  ;;  %720 = vst [vmem:[#allocation1] ss:$2 sm:$0xff] %v3173_v1  ;;  %v573_v17 = vld.sshfl [vmem:[#allocation1 + $0x20] sm:$0xff pattern:$0x75316420] }
  0x2b   : > { %314 = vrot.lane.b32.xlu2 %v301_v9, %s3112_s28  ;;  %724 = vst [vmem:[#allocation1 + $0x20] ss:$2 sm:$0xff] %v3175_v2 }
  0x2f   : > { %v728_v18 = vld.sshfl [vmem:[#allocation1 + $0x18] sm:$0xff pattern:$0x75316420]  ;;  %v727_v19 = vld.sshfl [vmem:[#allocation1 + $0x10] sm:$0xff pattern:$0x75316420] }
  0x30   : > { %880 = vst [vmem:[#allocation1 + $0x10] ss:$2 sm:$0xff] %v3171_v0 }
  0x31   : > { %v725_v20 = vld.sshfl [vmem:[#allocation1] sm:$0xff pattern:$0x75316420]  ;;  %v726_v21 = vld.sshfl [vmem:[#allocation1 + $0x8] sm:$0xff pattern:$0x75316420] }
  0x32   : > { %280 = vrot.lane.b32.xlu0 %v267_v4, %s3111_s27  ;;  %579 = vrot.lane.b32.xlu1 %v569_v15, %s3113_s29  ;;  %v729_v22 = vld.sshfl [vmem:[#allocation1 + $0x20] sm:$0xff pattern:$0x75316420]  ;;  %878 = vst [vmem:[#allocation1] ss:$2 sm:$0xff] %v3173_v1 }
  0x33   : > { %882 = vst [vmem:[#allocation1 + $0x20] ss:$2 sm:$0xff] %v3175_v2  ;;  %587 = vrot.lane.b32.xlu2 %v573_v17, %s3113_s29  ;;  %v292_v4 = vld [vmem:[%s3695_s1] sm:$0xff] }
  0x37   : > { %v3204_v23 = vld.sshfl [vmem:[#allocation1 + $0x10] sm:$0xff pattern:$0x75316420]  ;;  %v3206_v24 = vld.sshfl [vmem:[#allocation1 + $0x18] sm:$0xff pattern:$0x75316420] }
  0x38   : > { %1008 = vst [vmem:[#allocation1 + $0x10] ss:$2 sm:$0xff] %v3171_v0 }
  0x39   : > { %v3209_v25 = vld.sshfl [vmem:[#allocation1] sm:$0xff pattern:$0x75316420]  ;;  %v3211_v26 = vld.sshfl [vmem:[#allocation1 + $0x8] sm:$0xff pattern:$0x75316420] }
  0x3a   : > { %581 = vrot.lane.b32.xlu0 %v570_v16, %s3113_s29  ;;  %583 = vrot.lane.b32.xlu1 %v571_v13, %s3113_s29  ;;  %v3215_v27 = vld.sshfl [vmem:[#allocation1 + $0x20] sm:$0xff pattern:$0x75316420]  ;;  %1006 = vst [vmem:[#allocation1] ss:$2 sm:$0xff] %v3173_v1 }
  0x3b   : > { %1010 = vst [vmem:[#allocation1 + $0x20] ss:$2 sm:$0xff] %v3175_v2  ;;  %585 = vrot.lane.b32.xlu2 %v572_v14, %s3113_s29 }
  0x3f   : > { %v1013_v28 = vld.sshfl [vmem:[#allocation1 + $0x10] sm:$0xff pattern:$0x75316420]  ;;  %v1014_v29 = vld.sshfl [vmem:[#allocation1 + $0x18] sm:$0xff pattern:$0x75316420] }
  0x40   : > { %1164 = vst [vmem:[#allocation1 + $0x10] ss:$2 sm:$0xff] %v3171_v0 }
  0x41   : > { %v1011_v30 = vld.sshfl [vmem:[#allocation1] sm:$0xff pattern:$0x75316420]  ;;  %v1012_v31 = vld.sshfl [vmem:[#allocation1 + $0x8] sm:$0xff pattern:$0x75316420] }
  0x42   : > { %743 = vrot.lane.b32.xlu1 %v729_v22, %s3114_s30  ;;  %735 = vrot.lane.b32.xlu0 %v725_v20, %s3114_s30  ;;  %1162 = vst [vmem:[#allocation1] ss:$2 sm:$0xff] %v3173_v1  ;;  %v1015_v32 = vld.sshfl [vmem:[#allocation1 + $0x20] sm:$0xff pattern:$0x75316420] }
  0x43   : > { %737 = vrot.lane.b32.xlu2 %v726_v21, %s3114_s30  ;;  %1166 = vst [vmem:[#allocation1 + $0x20] ss:$2 sm:$0xff] %v3175_v2 }
  0x47   : > { %v1169_v33 = vld.sshfl [vmem:[#allocation1 + $0x10] sm:$0xff pattern:$0x75316420]  ;;  %v1170_v34 = vld.sshfl [vmem:[#allocation1 + $0x18] sm:$0xff pattern:$0x75316420] }
  0x48   : > { %1320 = vst [vmem:[#allocation1 + $0x10] ss:$2 sm:$0xff] %v3171_v0 }
  0x49   : > { %v1167_v35 = vld.sshfl [vmem:[#allocation1] sm:$0xff pattern:$0x75316420]  ;;  %v1168_v36 = vld.sshfl [vmem:[#allocation1 + $0x8] sm:$0xff pattern:$0x75316420] }
  0x4a   : > { %741 = vrot.lane.b32.xlu1 %v728_v18, %s3114_s30  ;;  %739 = vrot.lane.b32.xlu0 %v727_v19, %s3114_s30  ;;  %v1171_v37 = vld.sshfl [vmem:[#allocation1 + $0x20] sm:$0xff pattern:$0x75316420]  ;;  %1318 = vst [vmem:[#allocation1] ss:$2 sm:$0xff] %v3173_v1  ;;  %v2870_v19 = vld [vmem:[%s3695_s1 + $0x10] sm:$0xff] }
  0x4b   : > { %1322 = vst [vmem:[#allocation1 + $0x20] ss:$2 sm:$0xff] %v3175_v2  ;;  %1023 = vrot.lane.b32.xlu2 %v1012_v31, %s3115_s7 }
  0x4f   : > { %v1325_v41 = vld.sshfl [vmem:[#allocation1 + $0x10] sm:$0xff pattern:$0x75316420]  ;;  %v1326_v42 = vld.sshfl [vmem:[#allocation1 + $0x18] sm:$0xff pattern:$0x75316420] }
  0x50   : > { %1476 = vst [vmem:[#allocation1 + $0x10] ss:$2 sm:$0xff] %v3171_v0 }
  0x51   : > { %v1324_v38 = vld.sshfl [vmem:[#allocation1 + $0x8] sm:$0xff pattern:$0x75316420]  ;;  %v1323_v39 = vld.sshfl [vmem:[#allocation1] sm:$0xff pattern:$0x75316420] }
  0x52   : > { %1025 = vrot.lane.b32.xlu0 %v1013_v28, %s3115_s7  ;;  %1021 = vrot.lane.b32.xlu1 %v1011_v30, %s3115_s7  ;;  %1474 = vst [vmem:[#allocation1] ss:$2 sm:$0xff] %v3173_v1  ;;  %v1327_v40 = vld.sshfl [vmem:[#allocation1 + $0x20] sm:$0xff pattern:$0x75316420]  ;;  %v2881_v30 = vld [vmem:[%s3695_s1 + $0x18] sm:$0xff] }
  0x53   : > { %1027 = vrot.lane.b32.xlu2 %v1014_v29, %s3115_s7  ;;  %1478 = vst [vmem:[#allocation1 + $0x20] ss:$2 sm:$0xff] %v3175_v2 }
  0x57   : > { %v1481_v45 = vld.sshfl [vmem:[#allocation1 + $0x10] sm:$0xff pattern:$0x75316420]  ;;  %v1482_v47 = vld.sshfl [vmem:[#allocation1 + $0x18] sm:$0xff pattern:$0x75316420] }
  0x59   : > { %v1479_v43 = vld.sshfl [vmem:[#allocation1] sm:$0xff pattern:$0x75316420]  ;;  %v1480_v46 = vld.sshfl [vmem:[#allocation1 + $0x8] sm:$0xff pattern:$0x75316420] }
  0x5a   : > { %1029 = vrot.lane.b32.xlu0 %v1015_v32, %s3115_s7  ;;  %1177 = vrot.lane.b32.xlu1 %v1167_v35, %s3116_s8  ;;  %v1483_v49 = vld.sshfl [vmem:[#allocation1 + $0x20] sm:$0xff pattern:$0x75316420] }
  0x5b   : > { %1179 = vrot.lane.b32.xlu2 %v1168_v36, %s3116_s8 }
  0x62   : > { %1181 = vrot.lane.b32.xlu0 %v1169_v33, %s3116_s8  ;;  %1183 = vrot.lane.b32.xlu1 %v1170_v34, %s3116_s8 }
  0x63   : > { %1185 = vrot.lane.b32.xlu2 %v1171_v37, %s3116_s8 }
  0x6a   : > { %1335 = vrot.lane.b32.xlu1 %v1324_v38, %s3117_s9  ;;  %1333 = vrot.lane.b32.xlu0 %v1323_v39, %s3117_s9  ;;  %v2892_v39 = vld [vmem:[%s3695_s1 + $0x20] sm:$0xff] }
  0x6b   : > { %1337 = vrot.lane.b32.xlu2 %v1325_v41, %s3117_s9 }
  0x72   : > { %1341 = vrot.lane.b32.xlu1 %v1327_v40, %s3117_s9  ;;  %1339 = vrot.lane.b32.xlu0 %v1326_v42, %s3117_s9 }
  0x73   : > { %1489 = vrot.lane.b32.xlu2 %v1479_v43, %s3118_s10 }
  0x74   : > { %v275_v44 = vpop.permute.xlu2 %274 }
  0x7a   : > { %1493 = vrot.lane.b32.xlu1 %v1481_v45, %s3118_s10  ;;  %1491 = vrot.lane.b32.xlu0 %v1480_v46, %s3118_s10  ;;  %v2903_v45 = vld [vmem:[%s3695_s1 + $0x28] sm:$0xff] }
  0x7b   : > { %1495 = vrot.lane.b32.xlu2 %v1482_v47, %s3118_s10 }
  0x7d   : > { %v283_v48 = vpop.permute.xlu2 %282 }
  0x7e   : > { %v291_v60 = vsel %vm286_vm3, %v283_v48, %v275_v44 }
  0x82   : > { %1497 = vrot.lane.b32.xlu0 %v1483_v49, %s3118_s10 }
  0x85   : > { %v315_v50 = vpop.permute.xlu2 %314 }
  0x8a   : > { %v279_v51 = vpop.permute.xlu1 %278 }
  0x8b   : > { %v277_v52 = vpop.permute.xlu0 %276 }
  0x8c   : > { %v290_v5 = vsel %vm286_vm3, %v275_v44, %v277_v52  ;;  %v289_v6 = vsel %vm286_vm3, %v277_v52, %v279_v51  ;;  %v2914_v52 = vld [vmem:[%s3695_s1 + $0x30] sm:$0xff] }
  0x8d   : > { %v588_v54 = vpop.permute.xlu2 %587 }
  0x94   : > { %v311_v56 = vpop.permute.xlu1 %310  ;;  %v309_v57 = vpop.permute.xlu0 %308 }
  0x95   : > { %v322_v59 = vsel %vm318_vm0, %v309_v57, %v311_v56  ;;  %v586_v61 = vpop.permute.xlu2 %585 }
  0x96   : > { %2852 = vmatpush.msk.msra.mxu1 %vm330_vm1, %v322_v59  ;;  %v590_v13 = vsel %vm589_vm4, %v586_v61, %v588_v54 }
  0x97   : > { %2853 = vmatmul.msk.f32.vlgmr.msra.gmra.mxu1 %vm326_vm2, %v2849_v58 }
  0x98   : > { %2860 = vmatpush.msk.msrb.mxu1 %vm330_vm1, %v291_v60 }
  0x9c   : > { %v313_v62 = vpop.permute.xlu1 %312  ;;  %v317_v63 = vpop.permute.xlu0 %316 }
  0x9d   : > { %v323_v0 = vsel %vm318_vm0, %v317_v63, %v309_v57  ;;  %v321_v1 = vsel %vm318_vm0, %v311_v56, %v313_v62  ;;  %v320_v2 = vsel %vm318_vm0, %v313_v62, %v315_v50  ;;  %v319_v3 = vsel %vm318_vm0, %v315_v50, %v317_v63  ;;  %v738_v7 = vpop.permute.xlu2 %737 }
  0x9e   : > { %2850 = vmatpush.msk.msra.mxu0 %vm330_vm1, %v323_v0  ;;  %2854 = vmatpush.msk.msra.mxu2 %vm330_vm1, %v321_v1  ;;  %v3119_v56 = vmov 0  }
  0x9f   : > { %2856 = vmatpush.msk.msra.mxu3 %vm330_vm1, %v320_v2  ;;  %2851 = vmatmul.msk.f32.vlgmr.msra.gmra.mxu0 %vm326_vm2, %v2849_v58 }
  0xa0   : > { %2855 = vmatmul.msk.f32.vlgmr.msra.gmra.mxu2 %vm326_vm2, %v2849_v58  ;;  %2857 = vmatmul.msk.f32.vlgmr.msra.gmra.mxu3 %vm326_vm2, %v2849_v58 }
  0xa1   : > { %2858 = vmatpush.msk.msrb.mxu0 %vm330_vm1, %v319_v3  ;;  %2861 = vmatmul.msk.f32.vlgmr.msrb.gmra.mxu1 %vm326_vm2, %v292_v4 }
  0xa2   : > { %2862 = vmatpush.msk.msrb.mxu2 %vm330_vm1, %v290_v5  ;;  %2864 = vmatpush.msk.msrb.mxu3 %vm330_vm1, %v289_v6 }
  0xa3   : > { %3020 = vset.pattern.permute.xlu1 %v3119_v56  ;;  %3101 = vset.pattern.permute.xlu2 %v3119_v56 }
  0xa4   : > { %v281_v8 = vpop.permute.xlu0 %280  ;;  %v580_v9 = vpop.permute.xlu1 %579  ;;  %3102 = vset.pattern.permute.xlu0 %v3119_v56 }
  0xa5   : > { %v287_v10 = vsel %vm286_vm3, %v281_v8, %v283_v48  ;;  %v288_v11 = vsel %vm286_vm3, %v279_v51, %v281_v8  ;;  %v594_v12 = vsel %vm589_vm4, %v588_v54, %v580_v9  ;;  %v1024_v20 = vpop.permute.xlu2 %1023  ;;  %v1630_v54 = vld [vmem:[%s3696_s2] sm:$0xff] }
  0xa6   : > { %2866 = vmatpush.msk.msra.mxu0 %vm330_vm1, %v288_v11  ;;  %2868 = vmatpush.msk.msra.mxu1 %vm330_vm1, %v287_v10 }
  0xa7   : > { %2859 = vmatmul.msk.f32.vlgmr.msrb.gmra.mxu0 %vm326_vm2, %v2849_v58  ;;  %2871 = vmatpush.msk.msra.mxu2 %vm330_vm1, %v594_v12 }
  0xa8   : > { %2863 = vmatmul.msk.f32.vlgmr.msrb.gmra.mxu2 %vm326_vm2, %v292_v4  ;;  %2865 = vmatmul.msk.f32.vlgmr.msrb.gmra.mxu3 %vm326_vm2, %v292_v4 }
  0xa9   : > { %2869 = vmatmul.msk.f32.vlgmr.msra.gmra.mxu1 %vm326_vm2, %v292_v4  ;;  %2879 = vmatpush.msk.msrb.mxu2 %vm330_vm1, %v590_v13 }
  0xaa   : > { %1633 = vperm.xlu1 %3020, %v1630_v54  }
  0xac   : > { %v582_v14 = vpop.permute.xlu0 %581  ;;  %v584_v15 = vpop.permute.xlu1 %583 }
  0xad   : > { %v593_v16 = vsel %vm589_vm4, %v580_v9, %v582_v14  ;;  %v591_v17 = vsel %vm589_vm4, %v584_v15, %v586_v61  ;;  %v592_v18 = vsel %vm589_vm4, %v582_v14, %v584_v15  ;;  %v1028_v31 = vpop.permute.xlu2 %1027  ;;  %v2925_v61 = vld [vmem:[%s3695_s1 + $0x38] sm:$0xff] }
  0xae   : > { %2873 = vmatpush.msk.msra.mxu3 %vm330_vm1, %v593_v16  ;;  %2875 = vmatpush.msk.msrb.mxu0 %vm330_vm1, %v592_v18 }
  0xaf   : > { %2867 = vmatmul.msk.f32.vlgmr.msra.gmra.mxu0 %vm326_vm2, %v292_v4  ;;  %2877 = vmatpush.msk.msrb.mxu1 %vm330_vm1, %v591_v17 }
  0xb0   : > { %2872 = vmatmul.msk.f32.vlgmr.msra.gmra.mxu2 %vm326_vm2, %v2870_v19  ;;  %2874 = vmatmul.msk.f32.vlgmr.msra.gmra.mxu3 %vm326_vm2, %v2870_v19 }
  0xb1   : > { %2878 = vmatmul.msk.f32.vlgmr.msrb.gmra.mxu1 %vm326_vm2, %v2870_v19 }
  0xb4   : > { %v744_v21 = vpop.permute.xlu1 %743  ;;  %v736_v22 = vpop.permute.xlu0 %735 }
  0xb5   : > { %v749_v28 = vsel %vm745_vm5, %v736_v22, %v738_v7  ;;  %v750_v29 = vsel %vm745_vm5, %v744_v21, %v736_v22 }
  0xb6   : > { %2882 = vmatpush.msk.msrb.mxu3 %vm330_vm1, %v750_v29  ;;  %2884 = vmatpush.msk.msra.mxu0 %vm330_vm1, %v749_v28 }
  0xb7   : > { %2876 = vmatmul.msk.f32.vlgmr.msrb.gmra.mxu0 %vm326_vm2, %v2870_v19 }
  0xb8   : > { %2880 = vmatmul.msk.f32.vlgmr.msrb.gmra.mxu2 %vm326_vm2, %v2870_v19  ;;  %2883 = vmatmul.msk.f32.vlgmr.msrb.gmra.mxu3 %vm326_vm2, %v2881_v30 }
  0xb9   : > { %2893 = vmatpush.msk.msrb.mxu0 %vm330_vm1, %v3209_v25  ;;  %v1180_v25 = vpop.permute.xlu2 %1179 }
  0xbc   : > { %v742_v32 = vpop.permute.xlu1 %741  ;;  %v740_v33 = vpop.permute.xlu0 %739 }
  0xbd   : > { %v746_v34 = vsel %vm745_vm5, %v742_v32, %v744_v21  ;;  %v747_v35 = vsel %vm745_vm5, %v740_v33, %v742_v32  ;;  %v748_v36 = vsel %vm745_vm5, %v738_v7, %v740_v33  ;;  %v2936_v7 = vld [vmem:[%s3695_s1 + $0x40] sm:$0xff] }
  0xbe   : > { %2886 = vmatpush.msk.msra.mxu1 %vm330_vm1, %v748_v36  ;;  %2888 = vmatpush.msk.msra.mxu2 %vm330_vm1, %v747_v35 }
  0xbf   : > { %2890 = vmatpush.msk.msra.mxu3 %vm330_vm1, %v746_v34  ;;  %2885 = vmatmul.msk.f32.vlgmr.msra.gmra.mxu0 %vm326_vm2, %v2881_v30 }
  0xc0   : > { %2887 = vmatmul.msk.f32.vlgmr.msra.gmra.mxu1 %vm326_vm2, %v2881_v30  ;;  %2889 = vmatmul.msk.f32.vlgmr.msra.gmra.mxu2 %vm326_vm2, %v2881_v30 }
  0xc1   : > { %2891 = vmatmul.msk.f32.vlgmr.msra.gmra.mxu3 %vm326_vm2, %v2881_v30  ;;  %2895 = vmatpush.msk.msrb.mxu1 %vm330_vm1, %v3211_v26 }
  0xc2   : > { %2897 = vmatpush.msk.msrb.mxu2 %vm330_vm1, %v3204_v23  ;;  %2899 = vmatpush.msk.msrb.mxu3 %vm330_vm1, %v3206_v24  ;;  %v1186_v24 = vpop.permute.xlu2 %1185 }
  0xc3   : > { %2901 = vmatpush.msk.msra.mxu0 %vm330_vm1, %v3215_v27 }
  0xc4   : > { %v1026_v37 = vpop.permute.xlu0 %1025  ;;  %v1022_v38 = vpop.permute.xlu1 %1021 }
  0xc5   : > { %v1033_v26 = vsel %vm1031_vm6, %v1026_v37, %v1028_v31  ;;  %v1034_v40 = vsel %vm1031_vm6, %v1024_v20, %v1026_v37  ;;  %v1035_v23 = vsel %vm1031_vm6, %v1022_v38, %v1024_v20 }
  0xc6   : > { %2904 = vmatpush.msk.msra.mxu1 %vm330_vm1, %v1035_v23  ;;  %2906 = vmatpush.msk.msra.mxu2 %vm330_vm1, %v1034_v40 }
  0xc7   : > { %2908 = vmatpush.msk.msra.mxu3 %vm330_vm1, %v1033_v26  ;;  %2894 = vmatmul.msk.f32.vlgmr.msrb.gmra.mxu0 %vm326_vm2, %v2892_v39 }
  0xc8   : > { %2896 = vmatmul.msk.f32.vlgmr.msrb.gmra.mxu1 %vm326_vm2, %v2892_v39  ;;  %2898 = vmatmul.msk.f32.vlgmr.msrb.gmra.mxu2 %vm326_vm2, %v2892_v39 }
  0xc9   : > { %2900 = vmatmul.msk.f32.vlgmr.msrb.gmra.mxu3 %vm326_vm2, %v2892_v39 }
  0xca   : > { %v1338_v53 = vpop.permute.xlu2 %1337 }
  0xcc   : > { %v1030_v27 = vpop.permute.xlu0 %1029  ;;  %v1178_v41 = vpop.permute.xlu1 %1177 }
  0xcd   : > { %v1032_v42 = vsel %vm1031_vm6, %v1028_v31, %v1030_v27  ;;  %v1036_v43 = vsel %vm1031_vm6, %v1030_v27, %v1022_v38  ;;  %v1191_v44 = vsel %vm1187_vm7, %v1178_v41, %v1180_v25  ;;  %v1192_v46 = vsel %vm1187_vm7, %v1186_v24, %v1178_v41 }
  0xce   : > { %2912 = vmatpush.msk.msrb.mxu1 %vm330_vm1, %v1036_v43  ;;  %2910 = vmatpush.msk.msrb.mxu0 %vm330_vm1, %v1032_v42 }
  0xcf   : > { %2902 = vmatmul.msk.f32.vlgmr.msra.gmra.mxu0 %vm326_vm2, %v2892_v39  ;;  %2915 = vmatpush.msk.msrb.mxu2 %vm330_vm1, %v1191_v44 }
  0xd0   : > { %2905 = vmatmul.msk.f32.vlgmr.msra.gmra.mxu1 %vm326_vm2, %v2903_v45  ;;  %2907 = vmatmul.msk.f32.vlgmr.msra.gmra.mxu2 %vm326_vm2, %v2903_v45 }
  0xd1   : > { %2909 = vmatmul.msk.f32.vlgmr.msra.gmra.mxu3 %vm326_vm2, %v2903_v45  ;;  %2923 = vmatpush.msk.msra.mxu2 %vm330_vm1, %v1192_v46 }
  0xd2   : > { %v1490_v62 = vpop.permute.xlu2 %1489 }
  0xd4   : > { %v1182_v47 = vpop.permute.xlu0 %1181  ;;  %v1184_v48 = vpop.permute.xlu1 %1183 }
  0xd5   : > { %v1190_v49 = vsel %vm1187_vm7, %v1180_v25, %v1182_v47  ;;  %v1188_v50 = vsel %vm1187_vm7, %v1184_v48, %v1186_v24  ;;  %v1189_v51 = vsel %vm1187_vm7, %v1182_v47, %v1184_v48 }
  0xd6   : > { %2917 = vmatpush.msk.msrb.mxu3 %vm330_vm1, %v1190_v49  ;;  %2919 = vmatpush.msk.msra.mxu0 %vm330_vm1, %v1189_v51 }
  0xd7   : > { %2911 = vmatmul.msk.f32.vlgmr.msrb.gmra.mxu0 %vm326_vm2, %v2903_v45  ;;  %2921 = vmatpush.msk.msra.mxu1 %vm330_vm1, %v1188_v50 }
  0xd8   : > { %2913 = vmatmul.msk.f32.vlgmr.msrb.gmra.mxu1 %vm326_vm2, %v2903_v45  ;;  %2916 = vmatmul.msk.f32.vlgmr.msrb.gmra.mxu2 %vm326_vm2, %v2914_v52 }
  0xd9   : > { %2918 = vmatmul.msk.f32.vlgmr.msrb.gmra.mxu3 %vm326_vm2, %v2914_v52 }
  0xda   : > { %v1496_v4 = vpop.permute.xlu2 %1495 }
  0xdc   : > { %v1336_v57 = vpop.permute.xlu1 %1335  ;;  %v1334_v58 = vpop.permute.xlu0 %1333 }
  0xdd   : > { %v1346_v59 = vsel %vm1343_vm8, %v1336_v57, %v1338_v53  ;;  %v1347_v60 = vsel %vm1343_vm8, %v1334_v58, %v1336_v57 }
  0xde   : > { %2926 = vmatpush.msk.msra.mxu3 %vm330_vm1, %v1347_v60  ;;  %2928 = vmatpush.msk.msrb.mxu0 %vm330_vm1, %v1346_v59 }
  0xdf   : > { %2920 = vmatmul.msk.f32.vlgmr.msra.gmra.mxu0 %vm326_vm2, %v2914_v52 }
  0xe0   : > { %2922 = vmatmul.msk.f32.vlgmr.msra.gmra.mxu1 %vm326_vm2, %v2914_v52  ;;  %2924 = vmatmul.msk.f32.vlgmr.msra.gmra.mxu2 %vm326_vm2, %v2914_v52 }
  0xe1   : > { %2927 = vmatmul.msk.f32.vlgmr.msra.gmra.mxu3 %vm326_vm2, %v2925_v61 }
  0xe4   : > { %v1342_v63 = vpop.permute.xlu1 %1341  ;;  %v1340_v0 = vpop.permute.xlu0 %1339 }
  0xe5   : > { %v1348_v1 = vsel %vm1343_vm8, %v1342_v63, %v1334_v58  ;;  %v1344_v2 = vsel %vm1343_vm8, %v1340_v0, %v1342_v63  ;;  %v1345_v3 = vsel %vm1343_vm8, %v1338_v53, %v1340_v0 }
  0xe6   : > { %2930 = vmatpush.msk.msrb.mxu1 %vm330_vm1, %v1345_v3  ;;  %2932 = vmatpush.msk.msrb.mxu2 %vm330_vm1, %v1344_v2 }
  0xe7   : > { %2934 = vmatpush.msk.msrb.mxu3 %vm330_vm1, %v1348_v1  ;;  %2929 = vmatmul.msk.f32.vlgmr.msrb.gmra.mxu0 %vm326_vm2, %v2925_v61 }
  0xe8   : > { %2931 = vmatmul.msk.f32.vlgmr.msrb.gmra.mxu1 %vm326_vm2, %v2925_v61  ;;  %2933 = vmatmul.msk.f32.vlgmr.msrb.gmra.mxu2 %vm326_vm2, %v2925_v61 }
  0xe9   : > { %2935 = vmatmul.msk.f32.vlgmr.msrb.gmra.mxu3 %vm326_vm2, %v2925_v61 }
  0xec   : > { %v1494_v5 = vpop.permute.xlu1 %1493  ;;  %v1492_v6 = vpop.permute.xlu0 %1491 }
  0xed   : > { %v1502_v8 = vsel %vm1499_vm9, %v1492_v6, %v1494_v5  ;;  %v1503_v9 = vsel %vm1499_vm9, %v1490_v62, %v1492_v6  ;;  %v1501_v10 = vsel %vm1499_vm9, %v1494_v5, %v1496_v4 }
  0xee   : > { %2937 = vmatpush.msk.msra.mxu0 %vm330_vm1, %v1503_v9  ;;  %2939 = vmatpush.msk.msra.mxu1 %vm330_vm1, %v1502_v8 }
  0xef   : > { %2941 = vmatpush.msk.msra.mxu2 %vm330_vm1, %v1501_v10  ;;  %2938 = vmatmul.msk.f32.vlgmr.msra.gmra.mxu0 %vm326_vm2, %v2936_v7 }
  0xf0   : > { %2940 = vmatmul.msk.f32.vlgmr.msra.gmra.mxu1 %vm326_vm2, %v2936_v7  ;;  %2942 = vmatmul.msk.f32.vlgmr.msra.gmra.mxu2 %vm326_vm2, %v2936_v7 }
  0xf4   : > { %v1498_v11 = vpop.permute.xlu0 %1497 }
  0xf5   : > { %v1500_v12 = vsel %vm1499_vm9, %v1496_v4, %v1498_v11  ;;  %v1504_v13 = vsel %vm1499_vm9, %v1498_v11, %v1490_v62 }
  0xf6   : > { %2943 = vmatpush.msk.msra.mxu3 %vm330_vm1, %v1500_v12  ;;  %2945 = vmatpush.msk.msrb.mxu0 %vm330_vm1, %v1504_v13  ;;  %v255_v13 = vld [vmem:[%s3699_s5] sm:$0x1f] }
  0xf7   : > { %2944 = vmatmul.msk.f32.vlgmr.msra.gmra.mxu3 %vm326_vm2, %v2936_v7  ;;  %2946 = vmatmul.msk.f32.vlgmr.msrb.gmra.mxu0 %vm326_vm2, %v2936_v7 }
 0x114   : > { %v383_v14 = vpop.f32.mrf.mxu1 }
 0x11c   : > { %v363_v15 = vpop.f32.mrf.mxu0 }
 0x11e   : > { %v481_v16 = vpop.f32.mrf.mxu1 }
 0x11f   : > { %v482_v49 = vadd.f32 %v481_v16, %v363_v15 }
 0x123   : > { %v403_v17 = vpop.f32.mrf.mxu2  ;;  %v423_v18 = vpop.f32.mrf.mxu3 }
 0x124   : > { %v443_v19 = vpop.f32.mrf.mxu0 }
 0x126   : > { %v561_v28 = vpop.f32.mrf.mxu1 }
 0x127   : > { %v562_v63 = vadd.f32 %v561_v28, %v443_v19 }
 0x12b   : > { %v501_v20 = vpop.f32.mrf.mxu2  ;;  %v521_v21 = vpop.f32.mrf.mxu3 }
 0x12c   : > { %v541_v22 = vpop.f32.mrf.mxu0  ;;  %v502_v50 = vadd.f32 %v501_v20, %v383_v14  ;;  %v522_v60 = vadd.f32 %v521_v21, %v403_v17  ;;  %v1634_v14 = vpop.permute.xlu1 %1633 }
 0x12d   : > { %v542_v29 = vadd.f32 %v541_v22, %v423_v18  ;;  %v1647_v22 = vperm.slane %v255_v13, 0 }
 0x12e   : > { %v692_v33 = vpop.f32.mrf.mxu1 }
 0x12f   : > { %v718_v20 = vadd.f32 %v692_v33, %v542_v29 }
 0x133   : > { %v632_v30 = vpop.f32.mrf.mxu2  ;;  %v652_v31 = vpop.f32.mrf.mxu3 }
 0x134   : > { %v672_v32 = vpop.f32.mrf.mxu0  ;;  %v715_v51 = vadd.f32 %v632_v30, %v482_v49  ;;  %v716_v52 = vadd.f32 %v652_v31, %v502_v50  ;;  %v1651_v50 = vperm.slane %v255_v13, 4 }
 0x135   : > { %v717_v1 = vadd.f32 %v672_v32, %v522_v60  ;;  %v1648_v32 = vperm.slane %v255_v13, 1 }
 0x13b   : > { %v712_v34 = vpop.f32.mrf.mxu2  ;;  %v788_v35 = vpop.f32.mrf.mxu3 }
 0x13c   : > { %v808_v36 = vpop.f32.mrf.mxu0  ;;  %v871_v53 = vadd.f32 %v788_v35, %v715_v51  ;;  %v719_v3 = vadd.f32 %v712_v34, %v562_v63 }
 0x13d   : > { %v828_v25 = vpop.f32.mrf.mxu1  ;;  %v872_v56 = vadd.f32 %v808_v36, %v716_v52 }
 0x13e   : > { %v873_v5 = vadd.f32 %v828_v25, %v717_v1 }
 0x143   : > { %v848_v37 = vpop.f32.mrf.mxu2 }
 0x144   : > { %v868_v38 = vpop.f32.mrf.mxu3  ;;  %v918_v39 = vpop.f32.mrf.mxu0  ;;  %v874_v35 = vadd.f32 %v848_v37, %v718_v20 }
 0x145   : > { %v938_v26 = vpop.f32.mrf.mxu1  ;;  %v1001_v58 = vadd.f32 %v918_v39, %v871_v53  ;;  %v875_v7 = vadd.f32 %v868_v38, %v719_v3 }
 0x146   : > { %v1002_v61 = vadd.f32 %v938_v26, %v872_v56 }
 0x14b   : > { %v958_v40 = vpop.f32.mrf.mxu2 }
 0x14c   : > { %v978_v23 = vpop.f32.mrf.mxu3  ;;  %v998_v24 = vpop.f32.mrf.mxu0  ;;  %v1003_v10 = vadd.f32 %v958_v40, %v873_v5 }
 0x14d   : > { %v1074_v27 = vpop.f32.mrf.mxu1  ;;  %v1005_v15 = vadd.f32 %v998_v24, %v875_v7  ;;  %v1004_v26 = vadd.f32 %v978_v23, %v874_v35 }
 0x14e   : > { %v1157_v0 = vadd.f32 %v1074_v27, %v1001_v58  ;;  %v1650_v58 = vperm.slane %v255_v13, 3 }
 0x153   : > { %v1094_v41 = vpop.f32.mrf.mxu2 }
 0x154   : > { %v1114_v42 = vpop.f32.mrf.mxu3  ;;  %v1134_v43 = vpop.f32.mrf.mxu0  ;;  %v1158_v2 = vadd.f32 %v1094_v41, %v1002_v61 }
 0x155   : > { %v1154_v44 = vpop.f32.mrf.mxu1  ;;  %v1159_v18 = vadd.f32 %v1114_v42, %v1003_v10  ;;  %v1160_v42 = vadd.f32 %v1134_v43, %v1004_v26 }
 0x156   : > { %v1161_v21 = vadd.f32 %v1154_v44, %v1005_v15 }
 0x15b   : > { %v1230_v45 = vpop.f32.mrf.mxu2 }
 0x15c   : > { %v1250_v46 = vpop.f32.mrf.mxu3  ;;  %v1270_v47 = vpop.f32.mrf.mxu0  ;;  %v1313_v4 = vadd.f32 %v1230_v45, %v1157_v0 }
 0x15d   : > { %v1290_v48 = vpop.f32.mrf.mxu1  ;;  %v1314_v6 = vadd.f32 %v1250_v46, %v1158_v2  ;;  %v1315_v30 = vadd.f32 %v1270_v47, %v1159_v18  ;;  %v1649_v47 = vperm.slane %v255_v13, 2 }
 0x15e   : > { %v1316_v37 = vadd.f32 %v1290_v48, %v1160_v42 }
 0x163   : > { %v1310_v54 = vpop.f32.mrf.mxu2 }
 0x164   : > { %v1406_v57 = vpop.f32.mrf.mxu0  ;;  %v1386_v62 = vpop.f32.mrf.mxu3  ;;  %v1317_v36 = vadd.f32 %v1310_v54, %v1161_v21 }
 0x165   : > { %v1426_v59 = vpop.f32.mrf.mxu1  ;;  %v1469_v8 = vadd.f32 %v1386_v62, %v1313_v4  ;;  %v1470_v11 = vadd.f32 %v1406_v57, %v1314_v6  ;;  %v2947_v4 = vld [vmem:[%s3697_s3 + $0x4] sm:$0x7] }
 0x166   : > { %v1471_v38 = vadd.f32 %v1426_v59, %v1315_v30 }
 0x16b   : > { %v1446_v9 = vpop.f32.mrf.mxu2 }
 0x16c   : > { %v1542_v12 = vpop.f32.mrf.mxu0  ;;  %v1466_v31 = vpop.f32.mrf.mxu3  ;;  %v1472_v23 = vadd.f32 %v1446_v9, %v1316_v37  ;;  %v1677_v9 = vld [vmem:[%s3697_s3] sm:$0x7] }
 0x16d   : > { %v1625_v16 = vadd.f32 %v1542_v12, %v1469_v8  ;;  %v1562_v17 = vpop.f32.mrf.mxu1  ;;  %v1473_v40 = vadd.f32 %v1466_v31, %v1317_v36 }
 0x16e   : > { %v1626_v19 = vadd.f32 %v1562_v17, %v1470_v11 }
 0x16f   : > { %v1636_v28 = vadd.f32 %v1634_v14, %v1625_v16 }
 0x170   : > { %v1637_v34 = vadd.f32 %v1634_v14, %v1626_v19 }
 0x171   : > { %v1641_v25 = vmax.f32 %v1636_v28, 0.0 }
 0x172   : > { %v1642_v39 = vmax.f32 %v1637_v34, 0.0 }
 0x173   : > { %v3472_v24 = vmul.f32 %v1647_v22, %v1641_v25  ;;  %v1582_v27 = vpop.f32.mrf.mxu2 }
 0x174   : > { %v3474_v41 = vmul.f32 %v1648_v32, %v1642_v39  ;;  %v1627_v29 = vadd.f32 %v1582_v27, %v1471_v38  ;;  %v1622_v33 = vpop.f32.mrf.mxu0 }
 0x175   : > { %v1629_v44 = vadd.f32 %v1622_v33, %v1473_v40  ;;  %v2958_v33 = vld [vmem:[%s3697_s3 + $0x8] sm:$0x7] }
 0x176   : > { %v1638_v45 = vadd.f32 %v1634_v14, %v1627_v29  ;;  %v3021_v46 = vpack.i.bf16 %v3474_v41, %v3472_v24 }
 0x177   : > { %v1640_v49 = vadd.f32 %v1634_v14, %v1629_v44 }
 0x178   : > { %v1643_v51 = vmax.f32 %v1638_v45, 0.0  ;;  %3022 = vrot.lane.b32.xlu2 %v3021_v46, %s3112_s28 }
 0x179   : > { %v1645_v52 = vmax.f32 %v1640_v49, 0.0 }
 0x17a   : > { %v1602_v53 = vpop.f32.mrf.mxu3  ;;  %v3479_v54 = vmul.f32 %v1649_v47, %v1643_v51 }
 0x17b   : > { %v3481_v56 = vmul.f32 %v1651_v50, %v1645_v52  ;;  %v1628_v43 = vadd.f32 %v1602_v53, %v1472_v23 }
 0x17c   : > { %v3036_v62 = vpack.i.bf16 %v3479_v54, %v3474_v41 }
 0x17d   : > { %v1639_v57 = vadd.f32 %v1634_v14, %v1628_v43  ;;  %v3031_v59 = vpack.i.bf16 %v3481_v56, %v3472_v24  ;;  %v3026_v48 = vpack.i.bf16 %v3479_v54, %v3481_v56 }
 0x17f   : > { %v1644_v60 = vmax.f32 %v1639_v57, 0.0  ;;  %3027 = vrot.lane.b32.xlu0 %v3026_v48, %s3112_s28 }
 0x180   : > { %3032 = vrot.lane.b32.xlu2 %v3031_v59, %s3111_s27 }
 0x181   : > { %v3489_v61 = vmul.f32 %v1650_v58, %v1644_v60  ;;  %v2964_v60 = vld [vmem:[%s3697_s3 + $0xc] sm:$0x7] }
 0x183   : > { %1684 = vrot.lane.b32.xlu1 %v3489_v61, %s3112_s28  ;;  %v3066_v63 = vpack.i.bf16 %v3489_v61, %v3479_v54  ;;  %v3096_v0 = vpack.i.bf16 %v3489_v61, %v3472_v24  ;;  %s251_s28 = scalar_lea.vmem %s3700_s6, %s3002_s23 }
 0x187   : > { %3037 = vrot.lane.b32.xlu0 %v3036_v62, %s3111_s27 }
 0x188   : > { %3042 = vrot.lane.b32.xlu2 %v3031_v59, %s3113_s29 }
 0x18b   : > { %1668 = vrot.lane.b32.xlu1 %v3489_v61, %s3111_s27 }
 0x18f   : > { %3047 = vrot.lane.b32.xlu0 %v3036_v62, %s3113_s29 }
 0x190   : > { %3052 = vrot.lane.b32.xlu2 %v3031_v59, %s3114_s30 }
 0x193   : > { %1908 = vrot.lane.b32.xlu1 %v3489_v61, %s3113_s29 }
 0x197   : > { %3057 = vrot.lane.b32.xlu0 %v3036_v62, %s3114_s30 }
 0x198   : > { %3062 = vrot.lane.b32.xlu2 %v3021_v46, %s3115_s7 }
 0x19b   : > { %2033 = vrot.lane.b32.xlu1 %v3489_v61, %s3114_s30 }
 0x19f   : > { %3067 = vrot.lane.b32.xlu0 %v3066_v63, %s3115_s7 }
 0x1a0   : > { %3072 = vrot.lane.b32.xlu2 %v3021_v46, %s3116_s8 }
 0x1a3   : > { %2270 = vrot.lane.b32.xlu1 %v3481_v56, %s3115_s7 }
 0x1a7   : > { %3077 = vrot.lane.b32.xlu0 %v3066_v63, %s3116_s8 }
 0x1a8   : > { %3082 = vrot.lane.b32.xlu2 %v3021_v46, %s3117_s9 }
 0x1ab   : > { %2395 = vrot.lane.b32.xlu1 %v3481_v56, %s3116_s8 }
 0x1af   : > { %3087 = vrot.lane.b32.xlu0 %v3066_v63, %s3117_s9 }
 0x1b0   : > { %3092 = vrot.lane.b32.xlu2 %v3036_v62, %s3118_s10 }
 0x1b3   : > { %2520 = vrot.lane.b32.xlu1 %v3481_v56, %s3117_s9 }
 0x1b7   : > { %3097 = vrot.lane.b32.xlu0 %v3096_v0, %s3118_s10 }
 0x1bb   : > { %2645 = vrot.lane.b32.xlu1 %v3481_v56, %s3118_s10 }
 0x1d2   : > { %v3023_v1 = vpop.permute.xlu2 %3022 }
 0x1d3   : > { %v3025_v2 = vunpack.i.h.bf16 %v3023_v1  ;;  %v3024_v3 = vunpack.i.l.bf16 %v3023_v1 }
 0x1d5   : > { %v1691_v5 = vsel %vm318_vm0, %v3024_v3, %v3025_v2 }
 0x1d6   : > { %1734 = vmatpush.msrb.mxu2 %v1691_v5 }
 0x1d7   : > { %2949 = vmatmul.msk.f32.vlgmr.msrb.gmra.mxu2 %vm1695_vm10, %v2947_v4 }
 0x1da   : > { %v3033_v6 = vpop.permute.xlu2 %3032 }
 0x1db   : > { %v3035_v7 = vunpack.i.h.bf16 %v3033_v6  ;;  %v3034_v8 = vunpack.i.l.bf16 %v3033_v6 }
 0x1dd   : > { %v1676_v10 = vsel %vm286_vm3, %v3035_v7, %v3034_v8 }
 0x1de   : > { %1817 = vmatpush.msra.mxu2 %v1676_v10 }
 0x1df   : > { %2953 = vmatmul.msk.f32.vlgmr.msra.gmra.mxu2 %vm1695_vm10, %v1677_v9 }
 0x1e2   : > { %v3043_v16 = vpop.permute.xlu2 %3042 }
 0x1e3   : > { %v3045_v21 = vunpack.i.h.bf16 %v3043_v16  ;;  %v3044_v22 = vunpack.i.l.bf16 %v3043_v16 }
 0x1e5   : > { %v1916_v25 = vsel %vm589_vm4, %v3045_v21, %v3044_v22 }
 0x1ea   : > { %v3053_v38 = vpop.permute.xlu2 %3052 }
 0x1eb   : > { %v3055_v26 = vunpack.i.h.bf16 %v3053_v38  ;;  %v3054_v40 = vunpack.i.l.bf16 %v3053_v38  ;;  %v2762_v38 = vld [vmem:[%s3698_s4] sm:$0x7] }
 0x1ec   : > { %2765 = vperm.xlu2 %3101, %v2762_v38  }
 0x1ed   : > { %v2041_v47 = vsel %vm745_vm5, %v3055_v26, %v3054_v40 }
 0x1f1   : > { %v3028_v11 = vpop.permute.xlu0 %3027 }
 0x1f2   : > { %v3030_v12 = vunpack.i.h.bf16 %v3028_v11  ;;  %v3029_v13 = vunpack.i.l.bf16 %v3028_v11  ;;  %v3063_v23 = vpop.permute.xlu2 %3062  ;;  %v2976_v11 = vld [vmem:[%s3697_s3 + $0x14] sm:$0x7] }
 0x1f3   : > { %v3065_v57 = vunpack.i.h.bf16 %v3063_v23  ;;  %v3064_v58 = vunpack.i.l.bf16 %v3063_v23 }
 0x1f4   : > { %v1692_v14 = vsel %vm318_vm0, %v3029_v13, %v3024_v3  ;;  %v1690_v15 = vsel %vm318_vm0, %v3025_v2, %v3030_v12 }
 0x1f5   : > { %v1685_v17 = vpop.permute.xlu1 %1684  ;;  %1714 = vmatpush.msrb.mxu1 %v1692_v14  ;;  %1754 = vmatpush.msrb.mxu3 %v1690_v15  ;;  %v2275_v63 = vsel %vm1031_vm6, %v3064_v58, %v3065_v57 }
 0x1f6   : > { %v1688_v18 = vsel %vm318_vm0, %v1685_v17, %v3029_v13  ;;  %v1689_v19 = vsel %vm318_vm0, %v3030_v12, %v1685_v17  ;;  %2948 = vmatmul.msk.f32.vlgmr.msrb.gmra.mxu1 %vm1695_vm10, %v2947_v4  ;;  %2950 = vmatmul.msk.f32.vlgmr.msrb.gmra.mxu3 %vm1695_vm10, %v2947_v4 }
 0x1f7   : > { %1774 = vmatpush.msra.mxu0 %v1689_v19  ;;  %1794 = vmatpush.msra.mxu1 %v1688_v18 }
 0x1f8   : > { %2951 = vmatmul.msk.f32.vlgmr.msra.gmra.mxu0 %vm1695_vm10, %v2947_v4 }
 0x1f9   : > { %v3038_v20 = vpop.permute.xlu0 %3037 }
 0x1fa   : > { %v3040_v28 = vunpack.i.h.bf16 %v3038_v20  ;;  %v3039_v30 = vunpack.i.l.bf16 %v3038_v20  ;;  %v3073_v2 = vpop.permute.xlu2 %3072 }
 0x1fb   : > { %v3075_v5 = vunpack.i.h.bf16 %v3073_v2  ;;  %v3074_v6 = vunpack.i.l.bf16 %v3073_v2 }
 0x1fc   : > { %v1675_v31 = vsel %vm286_vm3, %v3034_v8, %v3039_v30  ;;  %v1674_v32 = vsel %vm286_vm3, %v3039_v30, %v3040_v28 }
 0x1fd   : > { %v1669_v34 = vpop.permute.xlu1 %1668  ;;  %1837 = vmatpush.msra.mxu3 %v1675_v31  ;;  %1857 = vmatpush.msrb.mxu0 %v1674_v32  ;;  %v2982_v32 = vld [vmem:[%s3697_s3 + $0x18] sm:$0x7] }
 0x1fe   : > { %v1672_v35 = vsel %vm286_vm3, %v1669_v34, %v3035_v7  ;;  %v1673_v36 = vsel %vm286_vm3, %v3040_v28, %v1669_v34  ;;  %2952 = vmatmul.msk.f32.vlgmr.msra.gmra.mxu1 %vm1695_vm10, %v2947_v4  ;;  %2954 = vmatmul.msk.f32.vlgmr.msra.gmra.mxu3 %vm1695_vm10, %v1677_v9 }
 0x1ff   : > { %1937 = vmatpush.msrb.mxu3 %v1916_v25  ;;  %1877 = vmatpush.msrb.mxu1 %v1673_v36 }
 0x200   : > { %1897 = vmatpush.msrb.mxu2 %v1672_v35  ;;  %2955 = vmatmul.msk.f32.vlgmr.msrb.gmra.mxu0 %vm1695_vm10, %v1677_v9 }
 0x201   : > { %2957 = vmatmul.msk.f32.vlgmr.msrb.gmra.mxu2 %vm1695_vm10, %v1677_v9  ;;  %v3048_v39 = vpop.permute.xlu0 %3047 }
 0x202   : > { %v3050_v27 = vunpack.i.h.bf16 %v3048_v39  ;;  %v3049_v29 = vunpack.i.l.bf16 %v3048_v39  ;;  %v3083_v13 = vpop.permute.xlu2 %3082 }
 0x203   : > { %v3085_v16 = vunpack.i.h.bf16 %v3083_v13  ;;  %v3084_v17 = vunpack.i.l.bf16 %v3083_v13 }
 0x204   : > { %v1915_v42 = vsel %vm589_vm4, %v3044_v22, %v3049_v29  ;;  %v1914_v44 = vsel %vm589_vm4, %v3049_v29, %v3050_v27 }
 0x205   : > { %v1909_v45 = vpop.permute.xlu1 %1908  ;;  %1957 = vmatpush.msra.mxu0 %v1915_v42  ;;  %1977 = vmatpush.msra.mxu1 %v1914_v44  ;;  %v2525_v22 = vsel %vm1343_vm8, %v3084_v17, %v3085_v16 }
 0x206   : > { %v1912_v46 = vsel %vm589_vm4, %v1909_v45, %v3045_v21  ;;  %v1913_v37 = vsel %vm589_vm4, %v3050_v27, %v1909_v45  ;;  %2956 = vmatmul.msk.f32.vlgmr.msrb.gmra.mxu1 %vm1695_vm10, %v1677_v9  ;;  %2959 = vmatmul.msk.f32.vlgmr.msrb.gmra.mxu3 %vm1695_vm10, %v2958_v33  ;;  %v2988_v45 = vld [vmem:[%s3697_s3 + $0x1c] sm:$0x7] }
 0x207   : > { %2062 = vmatpush.msrb.mxu0 %v2041_v47  ;;  %1997 = vmatpush.msra.mxu2 %v1913_v37  ;;  %v2994_v47 = vld [vmem:[%s3697_s3 + $0x20] sm:$0x7] }
 0x208   : > { %2017 = vmatpush.msra.mxu3 %v1912_v46  ;;  %2960 = vmatmul.msk.f32.vlgmr.msra.gmra.mxu0 %vm1695_vm10, %v2958_v33 }
 0x209   : > { %2962 = vmatmul.msk.f32.vlgmr.msra.gmra.mxu2 %vm1695_vm10, %v2958_v33  ;;  %v3058_v49 = vpop.permute.xlu0 %3057 }
 0x20a   : > { %v3060_v50 = vunpack.i.h.bf16 %v3058_v49  ;;  %v3059_v51 = vunpack.i.l.bf16 %v3058_v49  ;;  %v3093_v30 = vpop.permute.xlu2 %3092 }
 0x20b   : > { %v3095_v34 = vunpack.i.h.bf16 %v3093_v30  ;;  %v3094_v35 = vunpack.i.l.bf16 %v3093_v30 }
 0x20c   : > { %v2040_v52 = vsel %vm745_vm5, %v3054_v40, %v3059_v51  ;;  %v2039_v53 = vsel %vm745_vm5, %v3059_v51, %v3060_v50 }
 0x20d   : > { %v2034_v43 = vpop.permute.xlu1 %2033  ;;  %2082 = vmatpush.msrb.mxu1 %v2040_v52  ;;  %2102 = vmatpush.msrb.mxu2 %v2039_v53  ;;  %v2649_v40 = vsel %vm1499_vm9, %v3094_v35, %v3095_v34 }
 0x20e   : > { %v2037_v59 = vsel %vm745_vm5, %v2034_v43, %v3055_v26  ;;  %v2038_v48 = vsel %vm745_vm5, %v3060_v50, %v2034_v43  ;;  %2961 = vmatmul.msk.f32.vlgmr.msra.gmra.mxu1 %vm1695_vm10, %v2958_v33  ;;  %2963 = vmatmul.msk.f32.vlgmr.msra.gmra.mxu3 %vm1695_vm10, %v2958_v33 }
 0x20f   : > { %2172 = vmatpush.msra.mxu1 %v3472_v24  ;;  %2192 = vmatpush.msra.mxu2 %v3474_v41 }
 0x210   : > { %2122 = vmatpush.msrb.mxu3 %v2038_v48  ;;  %2142 = vmatpush.msra.mxu0 %v2037_v59 }
 0x211   : > { %2965 = vmatmul.msk.f32.vlgmr.msrb.gmra.mxu0 %vm1695_vm10, %v2964_v60  ;;  %2967 = vmatmul.msk.f32.vlgmr.msrb.gmra.mxu2 %vm1695_vm10, %v2964_v60  ;;  %v3068_v62 = vpop.permute.xlu0 %3067 }
 0x212   : > { %2212 = vmatpush.msra.mxu3 %v3479_v54  ;;  %2232 = vmatpush.msrb.mxu0 %v3489_v61  ;;  %v3069_v0 = vunpack.i.l.bf16 %v3068_v62  ;;  %v3070_v41 = vunpack.i.h.bf16 %v3068_v62  ;;  %v2970_v54 = vld [vmem:[%s3697_s3 + $0x10] sm:$0x7] }
 0x213   : > { %2297 = vmatpush.msrb.mxu2 %v2275_v63 }
 0x214   : > { %v2274_v24 = vsel %vm1031_vm6, %v3065_v57, %v3069_v0  ;;  %v2273_v3 = vsel %vm1031_vm6, %v3069_v0, %v3070_v41 }
 0x215   : > { %v2271_v1 = vpop.permute.xlu1 %2270 }
 0x216   : > { %2966 = vmatmul.msk.f32.vlgmr.msrb.gmra.mxu1 %vm1695_vm10, %v2964_v60  ;;  %2968 = vmatmul.msk.f32.vlgmr.msrb.gmra.mxu3 %vm1695_vm10, %v2964_v60  ;;  %v2276_v61 = vsel %vm1031_vm6, %v2271_v1, %v3064_v58  ;;  %v2272_v10 = vsel %vm1031_vm6, %v3070_v41, %v2271_v1 }
 0x217   : > { %2252 = vmatpush.msrb.mxu1 %v3481_v56  ;;  %2317 = vmatpush.msrb.mxu3 %v2274_v24  ;;  %v2400_v56 = vsel %vm1187_vm7, %v3074_v6, %v3075_v5 }
 0x219   : > { %2969 = vmatmul.msk.f32.vlgmr.msra.gmra.mxu0 %vm1695_vm10, %v2964_v60  ;;  %2972 = vmatmul.msk.f32.vlgmr.msra.gmra.mxu2 %vm1695_vm10, %v2970_v54  ;;  %v3078_v4 = vpop.permute.xlu0 %3077 }
 0x21a   : > { %2337 = vmatpush.msra.mxu0 %v2273_v3  ;;  %2377 = vmatpush.msra.mxu2 %v2276_v61  ;;  %v3080_v7 = vunpack.i.h.bf16 %v3078_v4  ;;  %v3079_v8 = vunpack.i.l.bf16 %v3078_v4 }
 0x21c   : > { %v2399_v14 = vsel %vm1187_vm7, %v3075_v5, %v3079_v8  ;;  %v2398_v21 = vsel %vm1187_vm7, %v3079_v8, %v3080_v7 }
 0x21d   : > { %v2396_v9 = vpop.permute.xlu1 %2395 }
 0x21e   : > { %2971 = vmatmul.msk.f32.vlgmr.msra.gmra.mxu1 %vm1695_vm10, %v2970_v54  ;;  %2973 = vmatmul.msk.f32.vlgmr.msra.gmra.mxu3 %vm1695_vm10, %v2970_v54  ;;  %v2397_v12 = vsel %vm1187_vm7, %v3080_v7, %v2396_v9  ;;  %v2401_v20 = vsel %vm1187_vm7, %v2396_v9, %v3074_v6 }
 0x21f   : > { %2357 = vmatpush.msra.mxu1 %v2272_v10  ;;  %2422 = vmatpush.msra.mxu3 %v2400_v56 }
 0x221   : > { %2974 = vmatmul.msk.f32.vlgmr.msrb.gmra.mxu0 %vm1695_vm10, %v2970_v54  ;;  %2977 = vmatmul.msk.f32.vlgmr.msrb.gmra.mxu2 %vm1695_vm10, %v2976_v11  ;;  %v3088_v15 = vpop.permute.xlu0 %3087 }
 0x222   : > { %2442 = vmatpush.msrb.mxu0 %v2399_v14  ;;  %2482 = vmatpush.msrb.mxu2 %v2397_v12  ;;  %v3090_v18 = vunpack.i.h.bf16 %v3088_v15  ;;  %v3089_v19 = vunpack.i.l.bf16 %v3088_v15 }
 0x224   : > { %v2523_v28 = vsel %vm1343_vm8, %v3089_v19, %v3090_v18  ;;  %v2524_v25 = vsel %vm1343_vm8, %v3085_v16, %v3089_v19 }
 0x225   : > { %v2521_v31 = vpop.permute.xlu1 %2520 }
 0x226   : > { %2975 = vmatmul.msk.f32.vlgmr.msrb.gmra.mxu1 %vm1695_vm10, %v2970_v54  ;;  %2978 = vmatmul.msk.f32.vlgmr.msrb.gmra.mxu3 %vm1695_vm10, %v2976_v11  ;;  %v2522_v36 = vsel %vm1343_vm8, %v3090_v18, %v2521_v31  ;;  %v2526_v26 = vsel %vm1343_vm8, %v2521_v31, %v3084_v17 }
 0x227   : > { %2462 = vmatpush.msrb.mxu1 %v2398_v21  ;;  %2502 = vmatpush.msrb.mxu3 %v2401_v20 }
 0x229   : > { %2979 = vmatmul.msk.f32.vlgmr.msra.gmra.mxu0 %vm1695_vm10, %v2976_v11  ;;  %2981 = vmatmul.msk.f32.vlgmr.msra.gmra.mxu2 %vm1695_vm10, %v2976_v11  ;;  %v3098_v39 = vpop.permute.xlu0 %3097 }
 0x22a   : > { %2547 = vmatpush.msra.mxu0 %v2525_v22  ;;  %2587 = vmatpush.msra.mxu2 %v2523_v28  ;;  %v3100_v27 = vunpack.i.h.bf16 %v3098_v39  ;;  %v3099_v29 = vunpack.i.l.bf16 %v3098_v39 }
 0x22c   : > { %v2650_v42 = vsel %vm1499_vm9, %v3099_v29, %v3094_v35  ;;  %v2648_v44 = vsel %vm1499_vm9, %v3095_v34, %v3100_v27 }
 0x22d   : > { %v2646_v33 = vpop.permute.xlu1 %2645 }
 0x22e   : > { %2980 = vmatmul.msk.f32.vlgmr.msra.gmra.mxu1 %vm1695_vm10, %v2976_v11  ;;  %2983 = vmatmul.msk.f32.vlgmr.msra.gmra.mxu3 %vm1695_vm10, %v2982_v32  ;;  %v2647_v46 = vsel %vm1499_vm9, %v3100_v27, %v2646_v33  ;;  %v2651_v37 = vsel %vm1499_vm9, %v2646_v33, %v3099_v29 }
 0x22f   : > { %2567 = vmatpush.msra.mxu1 %v2524_v25  ;;  %2607 = vmatpush.msra.mxu3 %v2522_v36 }
 0x231   : > { %2984 = vmatmul.msk.f32.vlgmr.msrb.gmra.mxu0 %vm1695_vm10, %v2982_v32  ;;  %2986 = vmatmul.msk.f32.vlgmr.msrb.gmra.mxu2 %vm1695_vm10, %v2982_v32 }
 0x232   : > { %2627 = vmatpush.msrb.mxu0 %v2526_v26  ;;  %2692 = vmatpush.msrb.mxu2 %v2649_v40 }
 0x236   : > { %2985 = vmatmul.msk.f32.vlgmr.msrb.gmra.mxu1 %vm1695_vm10, %v2982_v32  ;;  %2987 = vmatmul.msk.f32.vlgmr.msrb.gmra.mxu3 %vm1695_vm10, %v2982_v32 }
 0x237   : > { %2672 = vmatpush.msrb.mxu1 %v2650_v42  ;;  %2712 = vmatpush.msrb.mxu3 %v2648_v44 }
 0x239   : > { %2989 = vmatmul.msk.f32.vlgmr.msra.gmra.mxu0 %vm1695_vm10, %v2988_v45  ;;  %2991 = vmatmul.msk.f32.vlgmr.msra.gmra.mxu2 %vm1695_vm10, %v2988_v45 }
 0x23a   : > { %2732 = vmatpush.msra.mxu0 %v2647_v46 }
 0x23e   : > { %2990 = vmatmul.msk.f32.vlgmr.msra.gmra.mxu1 %vm1695_vm10, %v2988_v45  ;;  %2992 = vmatmul.msk.f32.vlgmr.msra.gmra.mxu3 %vm1695_vm10, %v2988_v45 }
 0x23f   : > { %2752 = vmatpush.msra.mxu1 %v2651_v37 }
 0x241   : > { %2993 = vmatmul.msk.f32.vlgmr.msrb.gmra.mxu0 %vm1695_vm10, %v2988_v45  ;;  %2996 = vmatmul.msk.f32.vlgmr.msrb.gmra.mxu2 %vm1695_vm10, %v2994_v47 }
 0x246   : > { %2995 = vmatmul.msk.f32.vlgmr.msrb.gmra.mxu1 %vm1695_vm10, %v2994_v47  ;;  %2997 = vmatmul.msk.f32.vlgmr.msrb.gmra.mxu3 %vm1695_vm10, %v2994_v47 }
 0x249   : > { %2998 = vmatmul.msk.f32.vlgmr.msra.gmra.mxu0 %vm1695_vm10, %v2994_v47 }
 0x24e   : > { %2999 = vmatmul.msk.f32.vlgmr.msra.gmra.mxu1 %vm1695_vm10, %v2994_v47 }
 0x25a   : > { %v1736_v55 = vpop.f32.mrf.mxu2 }
 0x262   : > { %v1819_v52 = vpop.f32.mrf.mxu2 }
 0x273   : > { %v1716_v49 = vpop.f32.mrf.mxu1 }
 0x274   : > { %v1820_v15 = vadd.f32 %v1819_v52, %v1716_v49 }
 0x275   : > { %v1776_v50 = vpop.f32.mrf.mxu0 }
 0x279   : > { %v1756_v51 = vpop.f32.mrf.mxu3 }
 0x27b   : > { %v1796_v23 = vpop.f32.mrf.mxu1 }
 0x27d   : > { %v1859_v53 = vpop.f32.mrf.mxu0 }
 0x27e   : > { %v1860_v31 = vadd.f32 %v1859_v53, %v1756_v51 }
 0x281   : > { %v1839_v43 = vpop.f32.mrf.mxu3 }
 0x282   : > { %v1840_v16 = vadd.f32 %v1839_v43, %v1736_v55  ;;  %v2766_v43 = vpop.permute.xlu2 %2765 }
 0x283   : > { %v1879_v57 = vpop.f32.mrf.mxu1 }
 0x284   : > { %v1899_v58 = vpop.f32.mrf.mxu2  ;;  %v1880_v17 = vadd.f32 %v1879_v57, %v1776_v50 }
 0x285   : > { %v1959_v59 = vpop.f32.mrf.mxu0  ;;  %v1900_v25 = vadd.f32 %v1899_v58, %v1796_v23 }
 0x286   : > { %v2023_v18 = vadd.f32 %v1959_v59, %v1840_v16 }
 0x289   : > { %v1939_v48 = vpop.f32.mrf.mxu3 }
 0x28a   : > { %v2022_v19 = vadd.f32 %v1939_v48, %v1820_v15 }
 0x28b   : > { %v1979_v60 = vpop.f32.mrf.mxu1 }
 0x28c   : > { %v1999_v62 = vpop.f32.mrf.mxu2  ;;  %v2024_v38 = vadd.f32 %v1979_v60, %v1860_v31 }
 0x28d   : > { %v2025_v21 = vadd.f32 %v1999_v62, %v1880_v17 }
 0x28e   : > { %v2064_v63 = vpop.f32.mrf.mxu0 }
 0x28f   : > { %v2147_v22 = vadd.f32 %v2064_v63, %v2022_v19 }
 0x291   : > { %v2019_v0 = vpop.f32.mrf.mxu3 }
 0x292   : > { %v2026_v29 = vadd.f32 %v2019_v0, %v1900_v25 }
 0x293   : > { %v2084_v24 = vpop.f32.mrf.mxu1 }
 0x294   : > { %v2104_v41 = vpop.f32.mrf.mxu2  ;;  %v2148_v28 = vadd.f32 %v2084_v24, %v2023_v18 }
 0x295   : > { %v2149_v33 = vadd.f32 %v2104_v41, %v2024_v38 }
 0x296   : > { %v2144_v1 = vpop.f32.mrf.mxu0 }
 0x297   : > { %v2151_v37 = vadd.f32 %v2144_v1, %v2026_v29 }
 0x299   : > { %v2124_v2 = vpop.f32.mrf.mxu3 }
 0x29a   : > { %v2150_v34 = vadd.f32 %v2124_v2, %v2025_v21 }
 0x29b   : > { %v2174_v54 = vpop.f32.mrf.mxu1 }
 0x29c   : > { %v2194_v61 = vpop.f32.mrf.mxu2  ;;  %v2257_v35 = vadd.f32 %v2174_v54, %v2147_v22 }
 0x29d   : > { %v2258_v36 = vadd.f32 %v2194_v61, %v2148_v28 }
 0x29e   : > { %v2234_v3 = vpop.f32.mrf.mxu0 }
 0x29f   : > { %v2260_v26 = vadd.f32 %v2234_v3, %v2150_v34 }
 0x2a1   : > { %v2214_v4 = vpop.f32.mrf.mxu3 }
 0x2a2   : > { %v2259_v47 = vadd.f32 %v2214_v4, %v2149_v33 }
 0x2a3   : > { %v2254_v5 = vpop.f32.mrf.mxu1 }
 0x2a4   : > { %v2299_v6 = vpop.f32.mrf.mxu2  ;;  %v2261_v52 = vadd.f32 %v2254_v5, %v2151_v37 }
 0x2a5   : > { %v2382_v40 = vadd.f32 %v2299_v6, %v2257_v35 }
 0x2a6   : > { %v2339_v7 = vpop.f32.mrf.mxu0 }
 0x2a7   : > { %v2384_v53 = vadd.f32 %v2339_v7, %v2259_v47 }
 0x2a9   : > { %v2319_v8 = vpop.f32.mrf.mxu3 }
 0x2aa   : > { %v2383_v27 = vadd.f32 %v2319_v8, %v2258_v36 }
 0x2ab   : > { %v2359_v9 = vpop.f32.mrf.mxu1 }
 0x2ac   : > { %v2379_v10 = vpop.f32.mrf.mxu2  ;;  %v2385_v42 = vadd.f32 %v2359_v9, %v2260_v26 }
 0x2ad   : > { %v2386_v48 = vadd.f32 %v2379_v10, %v2261_v52 }
 0x2ae   : > { %v2444_v56 = vpop.f32.mrf.mxu0 }
 0x2af   : > { %v2508_v44 = vadd.f32 %v2444_v56, %v2383_v27 }
 0x2b1   : > { %v2424_v11 = vpop.f32.mrf.mxu3 }
 0x2b2   : > { %v2507_v45 = vadd.f32 %v2424_v11, %v2382_v40 }
 0x2b3   : > { %v2464_v12 = vpop.f32.mrf.mxu1 }
 0x2b4   : > { %v2484_v13 = vpop.f32.mrf.mxu2  ;;  %v2509_v60 = vadd.f32 %v2464_v12, %v2384_v53 }
 0x2b5   : > { %v2510_v55 = vadd.f32 %v2484_v13, %v2385_v42 }
 0x2b6   : > { %v2549_v14 = vpop.f32.mrf.mxu0 }
 0x2b7   : > { %v2632_v49 = vadd.f32 %v2549_v14, %v2507_v45 }
 0x2b9   : > { %v2504_v20 = vpop.f32.mrf.mxu3 }
 0x2ba   : > { %v2511_v24 = vadd.f32 %v2504_v20, %v2386_v48 }
 0x2bb   : > { %v2569_v30 = vpop.f32.mrf.mxu1 }
 0x2bc   : > { %v2589_v32 = vpop.f32.mrf.mxu2  ;;  %v2633_v50 = vadd.f32 %v2569_v30, %v2508_v44 }
 0x2bd   : > { %v2634_v41 = vadd.f32 %v2589_v32, %v2509_v60 }
 0x2be   : > { %v2629_v39 = vpop.f32.mrf.mxu0 }
 0x2bf   : > { %v2636_v3 = vadd.f32 %v2629_v39, %v2511_v24 }
 0x2c1   : > { %v2609_v46 = vpop.f32.mrf.mxu3 }
 0x2c2   : > { %v2635_v57 = vadd.f32 %v2609_v46, %v2510_v55 }
 0x2c3   : > { %v2674_v51 = vpop.f32.mrf.mxu1 }
 0x2c4   : > { %v2694_v23 = vpop.f32.mrf.mxu2  ;;  %v2757_v58 = vadd.f32 %v2674_v51, %v2632_v49 }
 0x2c5   : > { %v2758_v59 = vadd.f32 %v2694_v23, %v2633_v50 }
 0x2c6   : > { %v2734_v62 = vpop.f32.mrf.mxu0  ;;  %v2768_v1 = vadd.f32 %v2766_v43, %v2757_v58 }
 0x2c7   : > { %v2769_v63 = vadd.f32 %v2766_v43, %v2758_v59  ;;  %v2760_v0 = vadd.f32 %v2734_v62, %v2635_v57 }
 0x2c9   : > { %v2777_v2 = vrot.slane %v2769_v63, 4  ;;  %v2771_v54 = vadd.f32 %v2766_v43, %v2760_v0  ;;  %v2714_v61 = vpop.f32.mrf.mxu3 }
 0x2ca   : > { %v2759_v4 = vadd.f32 %v2714_v61, %v2634_v41 }
 0x2cb   : > { %v2754_v5 = vpop.f32.mrf.mxu1  ;;  %v2780_v6 = vsel %vm2779_vm11, %v2768_v1, %v2777_v2  ;;  %v2778_v7 = vrot.slane %v2771_v54, 4 }
 0x2cc   : > { %v2770_v8 = vadd.f32 %v2766_v43, %v2759_v4  ;;  %v2761_v9 = vadd.f32 %v2754_v5, %v2636_v3  ;;  %2784 = vst [vmem:[%s251_s28] sm:$0x77] %v2780_v6 }
 0x2ce   : > { %v2781_v10 = vsel %vm2779_vm11, %v2770_v8, %v2778_v7  ;;  %v2772_v56 = vadd.f32 %v2766_v43, %v2761_v9 }
 0x2cf   : > { %2785 = vst [vmem:[%s251_s28 + $0x8] sm:$0x77] %v2781_v10 }
 0x2d0   : > { %2786 = vst [vmem:[%s251_s28 + $0x10] sm:$0x7] %v2772_v56 }
 0x2d1 PF: > { %s16_s21 = sadd.s32 1, %s3109_s21  }
 0x2d2   : > { %p13_p4 = scmp.ge.s32.totalorder %s16_s21, 4  }
 0x2d4   :  { %15 = sbr.rel (!%p13_p4) target bundleno = 1 (0x1), region = 108 }

</bundles_post_ra>
